<compile_context>
chip_gen: v6e
topology: v6e:2x2x1
jax: 0.10.0
libtpu: 0.0.40
codegen_flags: <defaults>
</compile_context>

<pallas_src>
import functools
import math

import jax
import jax.numpy as jnp
from jax.experimental import pallas as pl
from jax.experimental.pallas import tpu as pltpu


# -----------------------------------------------------------------------------
# Per-generation knobs
# -----------------------------------------------------------------------------

_VMEM_CAP = None


def _tpu_vmem_capacity():
    global _VMEM_CAP
    if _VMEM_CAP is None:
        cap = None
        try:
            info = pltpu.get_tpu_info()
            cap = getattr(info, "vmem_capacity_bytes", None)
        except Exception:
            cap = None
        _VMEM_CAP = int(cap) if cap else 64 * 1024 * 1024
    return _VMEM_CAP


def _vmem_limit_bytes():
    # v5e/v6e (128 MiB) -> 96 MiB scoped limit; v7x (64 MiB) -> 48 MiB.
    return int(min(100 * 1024 * 1024, (_tpu_vmem_capacity() * 3) // 4))


def _default_tiles():
    # (tm_max, tn_max, tk_max); larger N/K tiles on 128-MiB-VMEM generations.
    if _tpu_vmem_capacity() >= 96 * 1024 * 1024:
        return 256, 1024, 1024
    return 256, 512, 1024


def _choose_tk(K, tk_max):
    """K tile that EXACTLY divides K (multiple of 128) or the full K."""
    if K <= tk_max:
        return K
    t = (tk_max // 128) * 128
    while t >= 128:
        if K % t == 0:
            return t
        t -= 128
    return K  # single K step (full rows)


# -----------------------------------------------------------------------------
# Pallas kernels
# -----------------------------------------------------------------------------

def _linear_kernel(*refs, activation, has_residual, has_ln, eps, single_k):
    """y = (LN(x)|x)_bf16 @ w_bf16 (+bias) (gelu) (+residual).

    single_k=True (all fused-LN calls and small-K calls): no accumulator
    scratch, result goes straight to the output block.  Otherwise classic
    f32 VMEM accumulator with pl.when init/flush on the K grid axis.
    """
    it = iter(refs)
    x_ref = next(it)
    w_ref = next(it)
    b_ref = next(it)
    g_ref = next(it) if has_ln else None
    be_ref = next(it) if has_ln else None
    r_ref = next(it) if has_residual else None
    o_ref = next(it)
    acc_ref = None if single_k else next(it)

    x = x_ref[...]
    if has_ln:
        # LN prologue needs full rows (K is never tiled when LN is fused).
        # TODO(synk): LN is recomputed per N tile; could cache LN'd rows in a
        # (tm, K) VMEM scratch under pl.when(j == 0) and reuse across N tiles.
        xf = x.astype(jnp.float32)
        mu = jnp.mean(xf, axis=-1, keepdims=True)
        var = jnp.mean((xf - mu) * (xf - mu), axis=-1, keepdims=True)
        xf = (xf - mu) * jax.lax.rsqrt(var + jnp.float32(eps))
        xf = xf * g_ref[...].astype(jnp.float32) + be_ref[...].astype(jnp.float32)
        xin = xf.astype(jnp.bfloat16)
    else:
        xin = x.astype(jnp.bfloat16)  # no-op when activations are already bf16

    part = jnp.dot(xin, w_ref[...], preferred_element_type=jnp.float32)

    def _epilogue(acc):
        y = acc + b_ref[...].astype(jnp.float32)
        if activation == "gelu":
            # exact (erf) GELU, matching torch.nn.functional.gelu default
            y = 0.5 * y * (1.0 + jax.lax.erf(y * jnp.float32(0.7071067811865476)))
        if has_residual:
            y = y + r_ref[...].astype(jnp.float32)
        o_ref[...] = y.astype(o_ref.dtype)

    if single_k:
        _epilogue(part)
    else:
        k = pl.program_id(2)

        @pl.when(k == 0)
        def _init():
            acc_ref[...] = jnp.zeros_like(acc_ref)

        acc_ref[...] += part

        @pl.when(k == pl.num_programs(2) - 1)
        def _finish():
            _epilogue(acc_ref[...])


def _attn_kernel(q_ref, k_ref, v_ref, o_ref, *, hg, head_dim):
    """One batch element x one head-group (128-lane-aligned QKV column group).

    The 1/sqrt(dh) attention scale is already folded into the Q projection.
    Heads are sliced in bf16 directly from the group block; each head's
    output is written into its lane slice of the (already lane-dense) output
    block, which Pallas writes back to HBM as one dense tile.
    """
    # TODO(synk): batch the per-head matmuls into one dot_general with a heads
    # batch dim (einshape relayout) to better fill the 256-wide MXUs.
    qb = q_ref[0]   # (S, hg*dh), bf16 -- no f32 materialization
    kb = k_ref[0]
    vb = v_ref[0]
    for h in range(hg):
        sl = slice(h * head_dim, (h + 1) * head_dim)
        q = qb[:, sl]
        k = kb[:, sl]
        v = vb[:, sl]
        # q @ k^T without materializing a transpose: contract last dims.
        s = jax.lax.dot_general(q, k, (((1,), (1,)), ((), ())),
                                preferred_element_type=jnp.float32)   # (S, S)
        s = s - jnp.max(s, axis=-1, keepdims=True)
        p = jnp.exp(s)
        p = p * pl.reciprocal(jnp.sum(p, axis=-1, keepdims=True))
        o = jnp.dot(p.astype(vb.dtype), v, preferred_element_type=jnp.float32)
        o_ref[0, :, sl] = o.astype(o_ref.dtype)


def _pool_kernel(x_ref, o_ref):
    """Mean over the token axis (AdaptiveAvgPool1d(1) over permuted seq dim)."""
    x = x_ref[0].astype(jnp.float32)                      # (S, D)
    o_ref[...] = jnp.mean(x, axis=0).reshape(1, 1, -1).astype(o_ref.dtype)


# -----------------------------------------------------------------------------
# pallas_call wrappers
# -----------------------------------------------------------------------------

def pallas_linear(x, w, b, *, ln=None, residual=None, activation="none",
                  eps=1e-12, out_dtype=None):
    M, K = x.shape
    Kw, N = w.shape
    assert Kw == K
    out_dtype = out_dtype or x.dtype
    if residual is not None:
        assert residual.shape == (M, N) and residual.dtype == out_dtype

    tm_max, tn_max, tk_max = _default_tiles()
    tm = M if M <= tm_max else (tm_max // 8) * 8          # fixed tile, cdiv grid
    tn = N if N <= tn_max else (tn_max // 128) * 128
    # LN prologue needs full rows -> no K tiling when LN is fused.
    tk = K if ln is not None else _choose_tk(K, tk_max)

    gm, gn, gk = pl.cdiv(M, tm), pl.cdiv(N, tn), K // tk
    single_k = gk == 1

    in_specs = [
        pl.BlockSpec((tm, tk), lambda i, j, k: (i, k)),
        pl.BlockSpec((tk, tn), lambda i, j, k: (k, j)),
        pl.BlockSpec((1, tn), lambda i, j, k: (0, j)),
    ]
    # TODO(synk): consider pipeline_mode=pl.Buffered(3) on the weight spec for
    # the big-K FFN matmuls on v5e (weight-stream DMA most exposed there).
    operands = [x, w.astype(jnp.bfloat16), b.reshape(1, N)]
    if ln is not None:
        g, be = ln
        in_specs += [pl.BlockSpec((1, tk), lambda i, j, k: (0, k)),
                     pl.BlockSpec((1, tk), lambda i, j, k: (0, k))]
        operands += [g.reshape(1, K), be.reshape(1, K)]
    io_aliases = {}
    if residual is not None:
        in_specs.append(pl.BlockSpec((tm, tn), lambda i, j, k: (i, j)))
        operands.append(residual)
        # Safe: the residual tile (i, j) is read before the output tile (i, j)
        # is written back, and callers never reuse the residual array after.
        io_aliases = {len(operands) - 1: 0}

    scratch_shapes = [] if single_k else [pltpu.VMEM((tm, tn), jnp.float32)]

    return pl.pallas_call(
        functools.partial(_linear_kernel, activation=activation,
                          has_residual=residual is not None,
                          has_ln=ln is not None, eps=eps, single_k=single_k),
        out_shape=jax.ShapeDtypeStruct((M, N), out_dtype),
        grid=(gm, gn, gk),
        in_specs=in_specs,
        out_specs=pl.BlockSpec((tm, tn), lambda i, j, k: (i, j)),
        scratch_shapes=scratch_shapes,
        input_output_aliases=io_aliases,
        compiler_params=pltpu.CompilerParams(
            dimension_semantics=("parallel", "parallel", "arbitrary"),
            vmem_limit_bytes=_vmem_limit_bytes()),
    )(*operands)


def pallas_attention(qkv, *, heads, head_dim, hidden, out_dtype=None):
    B, S, H3 = qkv.shape
    assert H3 == 3 * hidden and hidden == heads * head_dim
    # Heads per grid step: aim for a 128-lane-aligned column group.
    hg = min(heads, max(1, 128 // head_dim))
    while heads % hg != 0:
        hg -= 1
    if (hg * head_dim) % 128 != 0:
        hg = heads                      # fall back to all heads per step
    gdh = hg * head_dim
    assert hidden % gdh == 0 and gdh % 128 == 0, (hidden, gdh)
    n_groups = heads // hg
    k_off = hidden // gdh
    v_off = 2 * hidden // gdh

    return pl.pallas_call(
        functools.partial(_attn_kernel, hg=hg, head_dim=head_dim),
        out_shape=jax.ShapeDtypeStruct((B, S, hidden), out_dtype or qkv.dtype),
        grid=(B, n_groups),
        in_specs=[pl.BlockSpec((1, S, gdh), lambda b, g: (b, 0, g)),
                  pl.BlockSpec((1, S, gdh), lambda b, g: (b, 0, k_off + g)),
                  pl.BlockSpec((1, S, gdh), lambda b, g: (b, 0, v_off + g))],
        out_specs=pl.BlockSpec((1, S, gdh), lambda b, g: (b, 0, g)),
        compiler_params=pltpu.CompilerParams(
            dimension_semantics=("parallel", "parallel"),
            vmem_limit_bytes=_vmem_limit_bytes()),
    )(qkv, qkv, qkv)


def pallas_meanpool(x):
    # TODO(synk): could be folded into the last FFN-2 epilogue to save one
    # full read of the hidden tensor; kept as its own (tiny) kernel.
    B, S, D = x.shape
    out = pl.pallas_call(
        _pool_kernel,
        out_shape=jax.ShapeDtypeStruct((B, 1, D), x.dtype),
        grid=(B,),
        in_specs=[pl.BlockSpec((1, S, D), lambda i: (i, 0, 0))],
        out_specs=pl.BlockSpec((1, 1, D), lambda i: (i, 0, 0)),
        compiler_params=pltpu.CompilerParams(dimension_semantics=("parallel",)),
    )(x)
    return out.reshape(B, D)


# -----------------------------------------------------------------------------
# ViT backbone (scaled-down config, same structure as HF ViT)
# -----------------------------------------------------------------------------

CFG = dict(
    image_size=32,        # (224 in the reference module)
    patch_size=8,         # (16)
    channels=3,
    hidden=128,           # (768)  -- lane-dense last dim
    layers=2,             # (12)
    heads=4,              # (12)
    intermediate=512,     # (3072)
    eps=1e-12,            # ViTConfig.layer_norm_eps default
)


def init_params(key, cfg):
    C, P, H = cfg["channels"], cfg["patch_size"], cfg["hidden"]
    I, L, heads = cfg["intermediate"], cfg["layers"], cfg["heads"]
    S = (cfg["image_size"] // P) ** 2 + 1
    dh = H // heads
    scale = 1.0 / math.sqrt(dh)
    std = 0.02
    keys = jax.random.split(key, 3 + L)
    params = {
        # conv weight (H,C,P,P) stored pre-flattened/transposed as (C*P*P, H), bf16 for MXU
        "patch_w": (jax.random.normal(keys[0], (C * P * P, H), jnp.float32) * std
                    ).astype(jnp.bfloat16),
        "patch_b": jnp.zeros((H,), jnp.float32),
        "cls_token": jax.random.normal(keys[1], (1, 1, H), jnp.float32) * std,
        "pos_emb": jax.random.normal(keys[2], (1, S, H), jnp.float32) * std,
        "layers": [],
    }
    for l in range(L):
        k = jax.random.split(keys[3 + l], 6)
        wq = jax.random.normal(k[0], (H, H), jnp.float32) * std
        wk = jax.random.normal(k[1], (H, H), jnp.float32) * std
        wv = jax.random.normal(k[2], (H, H), jnp.float32) * std
        bq = jnp.zeros((H,), jnp.float32)
        bk = jnp.zeros((H,), jnp.float32)
        bv = jnp.zeros((H,), jnp.float32)
        # Fused QKV weight/bias; 1/sqrt(dh) attention scale folded into the Q slice.
        w_qkv = jnp.concatenate([wq * scale, wk, wv], axis=1).astype(jnp.bfloat16)
        b_qkv = jnp.concatenate([bq * scale, bk, bv], axis=0)
        params["layers"].append({
            "ln1_g": jnp.ones((H,), jnp.float32), "ln1_b": jnp.zeros((H,), jnp.float32),
            "w_qkv": w_qkv, "b_qkv": b_qkv,
            "wo": (jax.random.normal(k[3], (H, H), jnp.float32) * std).astype(jnp.bfloat16),
            "bo": jnp.zeros((H,), jnp.float32),
            "ln2_g": jnp.ones((H,), jnp.float32), "ln2_b": jnp.zeros((H,), jnp.float32),
            "w1": (jax.random.normal(k[4], (H, I), jnp.float32) * std).astype(jnp.bfloat16),
            "b1": jnp.zeros((I,), jnp.float32),
            "w2": (jax.random.normal(k[5], (I, H), jnp.float32) * std).astype(jnp.bfloat16),
            "b2": jnp.zeros((H,), jnp.float32),
        })
    return params


def vit_backbone_forward(x_nchw, params, cfg):
    B, C, Hi, Wi = x_nchw.shape
    P, H, heads = cfg["patch_size"], cfg["hidden"], cfg["heads"]
    eps = cfg["eps"]
    nph, npw = Hi // P, Wi // P
    num_patches = nph * npw
    S = num_patches + 1
    dh = H // heads

    # --- patch embedding (Conv2d k=stride=P == patch-flatten matmul) ---
    # TODO(synk): fold this im2col transpose into the patch-embed BlockSpec
    # index_map to remove the one remaining pre-kernel HBM round trip.
    xp = x_nchw.reshape(B, C, nph, P, npw, P)
    xp = xp.transpose(0, 2, 4, 1, 3, 5).reshape(B * num_patches, C * P * P)
    patch_emb = pallas_linear(xp, params["patch_w"], params["patch_b"],
                              out_dtype=jnp.float32)
    patch_emb = patch_emb.reshape(B, num_patches, H)

    # --- CLS token + position embeddings (glue) ---
    cls = jnp.broadcast_to(params["cls_token"], (B, 1, H))
    hidden = jnp.concatenate([cls, patch_emb], axis=1) + params["pos_emb"]   # (B,S,H) f32
    # TODO(synk): dropout layers are identity in eval mode and are omitted.

    # --- pre-LN transformer encoder layers ---
    for lyr in params["layers"]:
        h2 = hidden.reshape(B * S, H)                                        # f32 residual stream
        # LN1 fused into the fused QKV projection (scale folded into Q weights); bf16 out.
        qkv = pallas_linear(h2, lyr["w_qkv"], lyr["b_qkv"],
                            ln=(lyr["ln1_g"], lyr["ln1_b"]), eps=eps,
                            out_dtype=jnp.bfloat16)                          # (B*S, 3H) bf16
        ctx = pallas_attention(qkv.reshape(B, S, 3 * H),
                               heads=heads, head_dim=dh, hidden=H)           # (B, S, H) bf16
        attn_out = pallas_linear(ctx.reshape(B * S, H), lyr["wo"], lyr["bo"],
                                 residual=h2, out_dtype=jnp.float32)         # +residual, f32
        # LN2 fused into FFN-1 prologue; exact erf-GELU fused as epilogue; bf16 out.
        ffn1 = pallas_linear(attn_out, lyr["w1"], lyr["b1"],
                             ln=(lyr["ln2_g"], lyr["ln2_b"]), eps=eps,
                             activation="gelu", out_dtype=jnp.bfloat16)
        hidden = pallas_linear(ffn1, lyr["w2"], lyr["b2"],
                               residual=attn_out,
                               out_dtype=jnp.float32).reshape(B, S, H)       # +residual, f32

    # hidden_states[-1] (before the final ViTModel layernorm);
    # AdaptiveAvgPool1d(1) over the permuted (B,H,S) == mean over tokens.
    return pallas_meanpool(hidden)                                           # (B, H) f32


# -----------------------------------------------------------------------------
# main
# -----------------------------------------------------------------------------

if __name__ == "__main__":
    key = jax.random.PRNGKey(0)
    pkey, xkey = jax.random.split(key)
    params = init_params(pkey, CFG)

    B = 2
    x = jax.random.normal(
        xkey, (B, CFG["channels"], CFG["image_size"], CFG["image_size"]),
        jnp.float32)                                   # NCHW, like PyTorch

    fwd = jax.jit(functools.partial(vit_backbone_forward, cfg=CFG))
    out = jax.block_until_ready(fwd(x, params))

    assert out.shape == (B, CFG["hidden"]), out.shape
    assert out.dtype == jnp.float32
    assert bool(jnp.all(jnp.isfinite(out)))
    print("KERNEL_OK")
</pallas_src>

<mosaic_0001>
module attributes {stable_mosaic.version = 11 : i64} {
  func.func @_linear_kernel(%arg0: i32, %arg1: i32, %arg2: i32, %arg3: memref<32x192xf32, #tpu.memory_space<vmem>>, %arg4: memref<192x128xbf16, #tpu.memory_space<vmem>>, %arg5: memref<1x128xf32, #tpu.memory_space<vmem>>, %arg6: memref<32x128xf32, #tpu.memory_space<vmem>>) attributes {dimension_semantics = [#tpu.dimension_semantics<parallel>, #tpu.dimension_semantics<parallel>, #tpu.dimension_semantics<arbitrary>], iteration_bounds = array<i64: 1, 1, 1>, scalar_prefetch = 0 : i64, scratch_operands = 0 : i64, tpu.core_type = #tpu.core_type<tc>, window_params = [{transform_indices = @transform_0, window_bounds = array<i64: 32, 192>}, {transform_indices = @transform_1, window_bounds = array<i64: 192, 128>}, {transform_indices = @transform_2, window_bounds = array<i64: 1, 128>}, {transform_indices = @transform_3, window_bounds = array<i64: 32, 128>}]} {
    %c0 = arith.constant 0 : index
    %c0_0 = arith.constant 0 : index
    %0 = vector.load %arg3[%c0, %c0_0] : memref<32x192xf32, #tpu.memory_space<vmem>>, vector<32x192xf32>
    %1 = arith.truncf %0 : vector<32x192xf32> to vector<32x192xbf16>
    %c0_1 = arith.constant 0 : index
    %c0_2 = arith.constant 0 : index
    %2 = vector.load %arg4[%c0_1, %c0_2] : memref<192x128xbf16, #tpu.memory_space<vmem>>, vector<192x128xbf16>
    %cst = arith.constant dense<0.000000e+00> : vector<32x128xf32>
    %3 = tpu.matmul %1, %2, %cst {dimension_numbers = #tpu.dot_dimension_numbers<[1], [0], [0], [1], [0, 0, 1, 1], [], []>} : vector<32x192xbf16>, vector<192x128xbf16>, vector<32x128xf32> -> vector<32x128xf32>
    %c0_3 = arith.constant 0 : index
    %c0_4 = arith.constant 0 : index
    %4 = vector.load %arg5[%c0_3, %c0_4] : memref<1x128xf32, #tpu.memory_space<vmem>>, vector<1x128xf32>
    %5 = vector.broadcast %4 : vector<1x128xf32> to vector<32x128xf32>
    %6 = arith.addf %3, %5 : vector<32x128xf32>
    %c0_5 = arith.constant 0 : index
    %c0_6 = arith.constant 0 : index
    %7 = vector.load %arg6[%c0_5, %c0_6] : memref<32x128xf32, #tpu.memory_space<vmem>>, vector<32x128xf32>
    tpu.vector_store %arg6[%c0_5, %c0_6], %6 {strides = array<i32>} : memref<32x128xf32, #tpu.memory_space<vmem>>, vector<32x128xf32>,
    return
  }
  func.func @transform_0(%arg0: i32, %arg1: i32, %arg2: i32) -> (i32, i32) {
    %c0_i32 = arith.constant 0 : i32
    return %arg0, %arg2 : i32, i32
  }
  func.func @transform_1(%arg0: i32, %arg1: i32, %arg2: i32) -> (i32, i32) {
    %c0_i32 = arith.constant 0 : i32
    return %arg2, %arg1 : i32, i32
  }
  func.func @transform_2(%arg0: i32, %arg1: i32, %arg2: i32) -> (i32, i32) {
    %c0_i32 = arith.constant 0 : i32
    %c0_i32_0 = arith.constant 0 : i32
    return %c0_i32, %arg1 : i32, i32
  }
  func.func @transform_3(%arg0: i32, %arg1: i32, %arg2: i32) -> (i32, i32) {
    %c0_i32 = arith.constant 0 : i32
    return %arg0, %arg1 : i32, i32
  }
}

module attributes {stable_mosaic.version = 11 : i64} {
  func.func @_linear_kernel(%arg0: i32, %arg1: i32, %arg2: i32, %arg3: memref<34x128xf32, #tpu.memory_space<vmem>>, %arg4: memref<128x384xbf16, #tpu.memory_space<vmem>>, %arg5: memref<1x384xf32, #tpu.memory_space<vmem>>, %arg6: memref<1x128xf32, #tpu.memory_space<vmem>>, %arg7: memref<1x128xf32, #tpu.memory_space<vmem>>, %arg8: memref<34x384xbf16, #tpu.memory_space<vmem>>) attributes {dimension_semantics = [#tpu.dimension_semantics<parallel>, #tpu.dimension_semantics<parallel>, #tpu.dimension_semantics<arbitrary>], iteration_bounds = array<i64: 1, 1, 1>, scalar_prefetch = 0 : i64, scratch_operands = 0 : i64, tpu.core_type = #tpu.core_type<tc>, window_params = [{transform_indices = @transform_0, window_bounds = array<i64: 34, 128>}, {transform_indices = @transform_1, window_bounds = array<i64: 128, 384>}, {transform_indices = @transform_2, window_bounds = array<i64: 1, 384>}, {transform_indices = @transform_3, window_bounds = array<i64: 1, 128>}, {transform_indices = @transform_4, window_bounds = array<i64: 1, 128>}, {transform_indices = @transform_5, window_bounds = array<i64: 34, 384>}]} {
    %c0 = arith.constant 0 : index
    %c0_0 = arith.constant 0 : index
    %0 = vector.load %arg3[%c0, %c0_0] : memref<34x128xf32, #tpu.memory_space<vmem>>, vector<34x128xf32>
    %cst = arith.constant dense<0.000000e+00> : vector<34xf32>
    %1 = vector.multi_reduction <add>, %0, %cst [1] : vector<34x128xf32> to vector<34xf32>
    %2 = vector.shape_cast %1 : vector<34xf32> to vector<34x1xf32>
    %cst_1 = arith.constant 1.280000e+02 : f32
    %3 = vector.broadcast %cst_1 : f32 to vector<34x1xf32>
    %4 = arith.divf %2, %3 : vector<34x1xf32>
    %5 = vector.broadcast %4 : vector<34x1xf32> to vector<34x128xf32>
    %6 = arith.subf %0, %5 : vector<34x128xf32>
    %7 = vector.broadcast %4 : vector<34x1xf32> to vector<34x128xf32>
    %8 = arith.subf %0, %7 : vector<34x128xf32>
    %9 = arith.mulf %6, %8 : vector<34x128xf32>
    %cst_2 = arith.constant dense<0.000000e+00> : vector<34xf32>
    %10 = vector.multi_reduction <add>, %9, %cst_2 [1] : vector<34x128xf32> to vector<34xf32>
    %11 = vector.shape_cast %10 : vector<34xf32> to vector<34x1xf32>
    %cst_3 = arith.constant 1.280000e+02 : f32
    %12 = vector.broadcast %cst_3 : f32 to vector<34x1xf32>
    %13 = arith.divf %11, %12 : vector<34x1xf32>
    %14 = vector.broadcast %4 : vector<34x1xf32> to vector<34x128xf32>
    %15 = arith.subf %0, %14 : vector<34x128xf32>
    %cst_4 = arith.constant 9.99999996E-13 : f32
    %16 = vector.broadcast %cst_4 : f32 to vector<34x1xf32>
    %17 = arith.addf %13, %16 : vector<34x1xf32>
    %18 = math.rsqrt %17 : vector<34x1xf32>
    %19 = vector.broadcast %18 : vector<34x1xf32> to vector<34x128xf32>
    %20 = arith.mulf %15, %19 : vector<34x128xf32>
    %c0_5 = arith.constant 0 : index
    %c0_6 = arith.constant 0 : index
    %21 = vector.load %arg6[%c0_5, %c0_6] : memref<1x128xf32, #tpu.memory_space<vmem>>, vector<1x128xf32>
    %22 = vector.broadcast %21 : vector<1x128xf32> to vector<34x128xf32>
    %23 = arith.mulf %20, %22 : vector<34x128xf32>
    %c0_7 = arith.constant 0 : index
    %c0_8 = arith.constant 0 : index
    %24 = vector.load %arg7[%c0_7, %c0_8] : memref<1x128xf32, #tpu.memory_space<vmem>>, vector<1x128xf32>
    %25 = vector.broadcast %24 : vector<1x128xf32> to vector<34x128xf32>
    %26 = arith.addf %23, %25 : vector<34x128xf32>
    %27 = arith.truncf %26 : vector<34x128xf32> to vector<34x128xbf16>
    %c0_9 = arith.constant 0 : index
    %c0_10 = arith.constant 0 : index
    %28 = vector.load %arg4[%c0_9, %c0_10] : memref<128x384xbf16, #tpu.memory_space<vmem>>, vector<128x384xbf16>
    %cst_11 = arith.constant dense<0.000000e+00> : vector<34x384xf32>
    %29 = tpu.matmul %27, %28, %cst_11 {dimension_numbers = #tpu.dot_dimension_numbers<[1], [0], [0], [1], [0, 0, 1, 1], [], []>} : vector<34x128xbf16>, vector<128x384xbf16>, vector<34x384xf32> -> vector<34x384xf32>
    %c0_12 = arith.constant 0 : index
    %c0_13 = arith.constant 0 : index
    %30 = vector.load %arg5[%c0_12, %c0_13] : memref<1x384xf32, #tpu.memory_space<vmem>>, vector<1x384xf32>
    %31 = vector.broadcast %30 : vector<1x384xf32> to vector<34x384xf32>
    %32 = arith.addf %29, %31 : vector<34x384xf32>
    %33 = arith.truncf %32 : vector<34x384xf32> to vector<34x384xbf16>
    %c0_14 = arith.constant 0 : index
    %c0_15 = arith.constant 0 : index
    %34 = vector.load %arg8[%c0_14, %c0_15] : memref<34x384xbf16, #tpu.memory_space<vmem>>, vector<34x384xbf16>
    tpu.vector_store %arg8[%c0_14, %c0_15], %33 {strides = array<i32>} : memref<34x384xbf16, #tpu.memory_space<vmem>>, vector<34x384xbf16>,
    return
  }
  func.func @transform_0(%arg0: i32, %arg1: i32, %arg2: i32) -> (i32, i32) {
    %c0_i32 = arith.constant 0 : i32
    return %arg0, %arg2 : i32, i32
  }
  func.func @transform_1(%arg0: i32, %arg1: i32, %arg2: i32) -> (i32, i32) {
    %c0_i32 = arith.constant 0 : i32
    return %arg2, %arg1 : i32, i32
  }
  func.func @transform_2(%arg0: i32, %arg1: i32, %arg2: i32) -> (i32, i32) {
    %c0_i32 = arith.constant 0 : i32
    %c0_i32_0 = arith.constant 0 : i32
    return %c0_i32, %arg1 : i32, i32
  }
  func.func @transform_3(%arg0: i32, %arg1: i32, %arg2: i32) -> (i32, i32) {
    %c0_i32 = arith.constant 0 : i32
    %c0_i32_0 = arith.constant 0 : i32
    return %c0_i32, %arg2 : i32, i32
  }
  func.func @transform_4(%arg0: i32, %arg1: i32, %arg2: i32) -> (i32, i32) {
    %c0_i32 = arith.constant 0 : i32
    %c0_i32_0 = arith.constant 0 : i32
    return %c0_i32, %arg2 : i32, i32
  }
  func.func @transform_5(%arg0: i32, %arg1: i32, %arg2: i32) -> (i32, i32) {
    %c0_i32 = arith.constant 0 : i32
    return %arg0, %arg1 : i32, i32
  }
}

module attributes {stable_mosaic.version = 11 : i64} {
  func.func @_linear_kernel(%arg0: i32, %arg1: i32, %arg2: i32, %arg3: memref<34x128xbf16, #tpu.memory_space<vmem>>, %arg4: memref<128x128xbf16, #tpu.memory_space<vmem>>, %arg5: memref<1x128xf32, #tpu.memory_space<vmem>>, %arg6: memref<34x128xf32, #tpu.memory_space<vmem>>, %arg7: memref<34x128xf32, #tpu.memory_space<vmem>>) attributes {dimension_semantics = [#tpu.dimension_semantics<parallel>, #tpu.dimension_semantics<parallel>, #tpu.dimension_semantics<arbitrary>], iteration_bounds = array<i64: 1, 1, 1>, scalar_prefetch = 0 : i64, scratch_operands = 0 : i64, tpu.core_type = #tpu.core_type<tc>, window_params = [{transform_indices = @transform_0, window_bounds = array<i64: 34, 128>}, {transform_indices = @transform_1, window_bounds = array<i64: 128, 128>}, {transform_indices = @transform_2, window_bounds = array<i64: 1, 128>}, {transform_indices = @transform_3, window_bounds = array<i64: 34, 128>}, {transform_indices = @transform_4, window_bounds = array<i64: 34, 128>}]} {
    %c0 = arith.constant 0 : index
    %c0_0 = arith.constant 0 : index
    %0 = vector.load %arg3[%c0, %c0_0] : memref<34x128xbf16, #tpu.memory_space<vmem>>, vector<34x128xbf16>
    %c0_1 = arith.constant 0 : index
    %c0_2 = arith.constant 0 : index
    %1 = vector.load %arg4[%c0_1, %c0_2] : memref<128x128xbf16, #tpu.memory_space<vmem>>, vector<128x128xbf16>
    %cst = arith.constant dense<0.000000e+00> : vector<34x128xf32>
    %2 = tpu.matmul %0, %1, %cst {dimension_numbers = #tpu.dot_dimension_numbers<[1], [0], [0], [1], [0, 0, 1, 1], [], []>} : vector<34x128xbf16>, vector<128x128xbf16>, vector<34x128xf32> -> vector<34x128xf32>
    %c0_3 = arith.constant 0 : index
    %c0_4 = arith.constant 0 : index
    %3 = vector.load %arg5[%c0_3, %c0_4] : memref<1x128xf32, #tpu.memory_space<vmem>>, vector<1x128xf32>
    %4 = vector.broadcast %3 : vector<1x128xf32> to vector<34x128xf32>
    %5 = arith.addf %2, %4 : vector<34x128xf32>
    %c0_5 = arith.constant 0 : index
    %c0_6 = arith.constant 0 : index
    %6 = vector.load %arg6[%c0_5, %c0_6] : memref<34x128xf32, #tpu.memory_space<vmem>>, vector<34x128xf32>
    %7 = arith.addf %5, %6 : vector<34x128xf32>
    %c0_7 = arith.constant 0 : index
    %c0_8 = arith.constant 0 : index
    %8 = vector.load %arg7[%c0_7, %c0_8] : memref<34x128xf32, #tpu.memory_space<vmem>>, vector<34x128xf32>
    tpu.vector_store %arg7[%c0_7, %c0_8], %7 {strides = array<i32>} : memref<34x128xf32, #tpu.memory_space<vmem>>, vector<34x128xf32>,
    return
  }
  func.func @transform_0(%arg0: i32, %arg1: i32, %arg2: i32) -> (i32, i32) {
    %c0_i32 = arith.constant 0 : i32
    return %arg0, %arg2 : i32, i32
  }
  func.func @transform_1(%arg0: i32, %arg1: i32, %arg2: i32) -> (i32, i32) {
    %c0_i32 = arith.constant 0 : i32
    return %arg2, %arg1 : i32, i32
  }
  func.func @transform_2(%arg0: i32, %arg1: i32, %arg2: i32) -> (i32, i32) {
    %c0_i32 = arith.constant 0 : i32
    %c0_i32_0 = arith.constant 0 : i32
    return %c0_i32, %arg1 : i32, i32
  }
  func.func @transform_3(%arg0: i32, %arg1: i32, %arg2: i32) -> (i32, i32) {
    %c0_i32 = arith.constant 0 : i32
    return %arg0, %arg1 : i32, i32
  }
  func.func @transform_4(%arg0: i32, %arg1: i32, %arg2: i32) -> (i32, i32) {
    %c0_i32 = arith.constant 0 : i32
    return %arg0, %arg1 : i32, i32
  }
}

module attributes {stable_mosaic.version = 11 : i64} {
  func.func @_attn_kernel(%arg0: i32, %arg1: i32, %arg2: memref<1x17x128xbf16, #tpu.memory_space<vmem>>, %arg3: memref<1x17x128xbf16, #tpu.memory_space<vmem>>, %arg4: memref<1x17x128xbf16, #tpu.memory_space<vmem>>, %arg5: memref<1x17x128xbf16, #tpu.memory_space<vmem>>) attributes {dimension_semantics = [#tpu.dimension_semantics<parallel>, #tpu.dimension_semantics<parallel>], iteration_bounds = array<i64: 2, 1>, scalar_prefetch = 0 : i64, scratch_operands = 0 : i64, tpu.core_type = #tpu.core_type<tc>, window_params = [{transform_indices = @transform_0, window_bounds = array<i64: 1, 17, 128>}, {transform_indices = @transform_1, window_bounds = array<i64: 1, 17, 128>}, {transform_indices = @transform_2, window_bounds = array<i64: 1, 17, 128>}, {transform_indices = @transform_3, window_bounds = array<i64: 1, 17, 128>}]} {
    %c0 = arith.constant 0 : index
    %c0_0 = arith.constant 0 : index
    %c0_1 = arith.constant 0 : index
    %0 = vector.load %arg2[%c0, %c0_0, %c0_1] : memref<1x17x128xbf16, #tpu.memory_space<vmem>>, vector<1x17x128xbf16>
    %1 = vector.shape_cast %0 : vector<1x17x128xbf16> to vector<17x128xbf16>
    %c0_2 = arith.constant 0 : index
    %c0_3 = arith.constant 0 : index
    %c0_4 = arith.constant 0 : index
    %2 = vector.load %arg3[%c0_2, %c0_3, %c0_4] : memref<1x17x128xbf16, #tpu.memory_space<vmem>>, vector<1x17x128xbf16>
    %3 = vector.shape_cast %2 : vector<1x17x128xbf16> to vector<17x128xbf16>
    %c0_5 = arith.constant 0 : index
    %c0_6 = arith.constant 0 : index
    %c0_7 = arith.constant 0 : index
    %4 = vector.load %arg4[%c0_5, %c0_6, %c0_7] : memref<1x17x128xbf16, #tpu.memory_space<vmem>>, vector<1x17x128xbf16>
    %5 = vector.shape_cast %4 : vector<1x17x128xbf16> to vector<17x128xbf16>
    %6 = vector.extract_strided_slice %1 {offsets = [0, 0], sizes = [17, 32], strides = [1, 1]} : vector<17x128xbf16> to vector<17x32xbf16>
    %7 = vector.extract_strided_slice %3 {offsets = [0, 0], sizes = [17, 32], strides = [1, 1]} : vector<17x128xbf16> to vector<17x32xbf16>
    %8 = vector.extract_strided_slice %5 {offsets = [0, 0], sizes = [17, 32], strides = [1, 1]} : vector<17x128xbf16> to vector<17x32xbf16>
    %cst = arith.constant dense<0.000000e+00> : vector<17x17xf32>
    %9 = tpu.matmul %6, %7, %cst {dimension_numbers = #tpu.dot_dimension_numbers<[1], [1], [0], [0], [0, 0, 1, 0], [], []>} : vector<17x32xbf16>, vector<17x32xbf16>, vector<17x17xf32> -> vector<17x17xf32>
    %cst_8 = arith.constant dense<0xFF800000> : vector<17xf32>
    %10 = vector.multi_reduction <maximumf>, %9, %cst_8 [1] : vector<17x17xf32> to vector<17xf32>
    %11 = vector.shape_cast %10 : vector<17xf32> to vector<17x1xf32>
    %12 = vector.broadcast %11 : vector<17x1xf32> to vector<17x17xf32>
    %13 = arith.subf %9, %12 : vector<17x17xf32>
    %14 = math.exp %13 : vector<17x17xf32>
    %cst_9 = arith.constant dense<0.000000e+00> : vector<17xf32>
    %15 = vector.multi_reduction <add>, %14, %cst_9 [1] : vector<17x17xf32> to vector<17xf32>
    %16 = vector.shape_cast %15 : vector<17xf32> to vector<17x1xf32>
    %17 = tpu.reciprocal %16 : vector<17x1xf32> -> vector<17x1xf32>
    %18 = vector.broadcast %17 : vector<17x1xf32> to vector<17x17xf32>
    %19 = arith.mulf %14, %18 : vector<17x17xf32>
    %20 = arith.truncf %19 : vector<17x17xf32> to vector<17x17xbf16>
    %cst_10 = arith.constant dense<0.000000e+00> : vector<17x32xf32>
    %21 = tpu.matmul %20, %8, %cst_10 {dimension_numbers = #tpu.dot_dimension_numbers<[1], [0], [0], [1], [0, 0, 1, 1], [], []>} : vector<17x17xbf16>, vector<17x32xbf16>, vector<17x32xf32> -> vector<17x32xf32>
    %22 = arith.truncf %21 : vector<17x32xf32> to vector<17x32xbf16>
    %c0_11 = arith.constant 0 : index
    %c0_12 = arith.constant 0 : index
    %c0_13 = arith.constant 0 : index
    %23 = vector.load %arg5[%c0_11, %c0_12, %c0_13] : memref<1x17x128xbf16, #tpu.memory_space<vmem>>, vector<1x17x32xbf16>
    %24 = vector.shape_cast %23 : vector<1x17x32xbf16> to vector<17x32xbf16>
    %25 = vector.shape_cast %22 : vector<17x32xbf16> to vector<1x17x32xbf16>
    tpu.vector_store %arg5[%c0_11, %c0_12, %c0_13], %25 {strides = array<i32>} : memref<1x17x128xbf16, #tpu.memory_space<vmem>>, vector<1x17x32xbf16>,
    %26 = vector.extract_strided_slice %1 {offsets = [0, 32], sizes = [17, 32], strides = [1, 1]} : vector<17x128xbf16> to vector<17x32xbf16>
    %27 = vector.extract_strided_slice %3 {offsets = [0, 32], sizes = [17, 32], strides = [1, 1]} : vector<17x128xbf16> to vector<17x32xbf16>
    %28 = vector.extract_strided_slice %5 {offsets = [0, 32], sizes = [17, 32], strides = [1, 1]} : vector<17x128xbf16> to vector<17x32xbf16>
    %cst_14 = arith.constant dense<0.000000e+00> : vector<17x17xf32>
    %29 = tpu.matmul %26, %27, %cst_14 {dimension_numbers = #tpu.dot_dimension_numbers<[1], [1], [0], [0], [0, 0, 1, 0], [], []>} : vector<17x32xbf16>, vector<17x32xbf16>, vector<17x17xf32> -> vector<17x17xf32>
    %cst_15 = arith.constant dense<0xFF800000> : vector<17xf32>
    %30 = vector.multi_reduction <maximumf>, %29, %cst_15 [1] : vector<17x17xf32> to vector<17xf32>
    %31 = vector.shape_cast %30 : vector<17xf32> to vector<17x1xf32>
    %32 = vector.broadcast %31 : vector<17x1xf32> to vector<17x17xf32>
    %33 = arith.subf %29, %32 : vector<17x17xf32>
    %34 = math.exp %33 : vector<17x17xf32>
    %cst_16 = arith.constant dense<0.000000e+00> : vector<17xf32>
    %35 = vector.multi_reduction <add>, %34, %cst_16 [1] : vector<17x17xf32> to vector<17xf32>
    %36 = vector.shape_cast %35 : vector<17xf32> to vector<17x1xf32>
    %37 = tpu.reciprocal %36 : vector<17x1xf32> -> vector<17x1xf32>
    %38 = vector.broadcast %37 : vector<17x1xf32> to vector<17x17xf32>
    %39 = arith.mulf %34, %38 : vector<17x17xf32>
    %40 = arith.truncf %39 : vector<17x17xf32> to vector<17x17xbf16>
    %cst_17 = arith.constant dense<0.000000e+00> : vector<17x32xf32>
    %41 = tpu.matmul %40, %28, %cst_17 {dimension_numbers = #tpu.dot_dimension_numbers<[1], [0], [0], [1], [0, 0, 1, 1], [], []>} : vector<17x17xbf16>, vector<17x32xbf16>, vector<17x32xf32> -> vector<17x32xf32>
    %42 = arith.truncf %41 : vector<17x32xf32> to vector<17x32xbf16>
    %c0_18 = arith.constant 0 : index
    %c0_19 = arith.constant 0 : index
    %c32 = arith.constant 32 : index
    %43 = vector.load %arg5[%c0_18, %c0_19, %c32] : memref<1x17x128xbf16, #tpu.memory_space<vmem>>, vector<1x17x32xbf16>
    %44 = vector.shape_cast %43 : vector<1x17x32xbf16> to vector<17x32xbf16>
    %45 = vector.shape_cast %42 : vector<17x32xbf16> to vector<1x17x32xbf16>
    tpu.vector_store %arg5[%c0_18, %c0_19, %c32], %45 {strides = array<i32>} : memref<1x17x128xbf16, #tpu.memory_space<vmem>>, vector<1x17x32xbf16>,
    %46 = vector.extract_strided_slice %1 {offsets = [0, 64], sizes = [17, 32], strides = [1, 1]} : vector<17x128xbf16> to vector<17x32xbf16>
    %47 = vector.extract_strided_slice %3 {offsets = [0, 64], sizes = [17, 32], strides = [1, 1]} : vector<17x128xbf16> to vector<17x32xbf16>
    %48 = vector.extract_strided_slice %5 {offsets = [0, 64], sizes = [17, 32], strides = [1, 1]} : vector<17x128xbf16> to vector<17x32xbf16>
    %cst_20 = arith.constant dense<0.000000e+00> : vector<17x17xf32>
    %49 = tpu.matmul %46, %47, %cst_20 {dimension_numbers = #tpu.dot_dimension_numbers<[1], [1], [0], [0], [0, 0, 1, 0], [], []>} : vector<17x32xbf16>, vector<17x32xbf16>, vector<17x17xf32> -> vector<17x17xf32>
    %cst_21 = arith.constant dense<0xFF800000> : vector<17xf32>
    %50 = vector.multi_reduction <maximumf>, %49, %cst_21 [1] : vector<17x17xf32> to vector<17xf32>
    %51 = vector.shape_cast %50 : vector<17xf32> to vector<17x1xf32>
    %52 = vector.broadcast %51 : vector<17x1xf32> to vector<17x17xf32>
    %53 = arith.subf %49, %52 : vector<17x17xf32>
    %54 = math.exp %53 : vector<17x17xf32>
    %cst_22 = arith.constant dense<0.000000e+00> : vector<17xf32>
    %55 = vector.multi_reduction <add>, %54, %cst_22 [1] : vector<17x17xf32> to vector<17xf32>
    %56 = vector.shape_cast %55 : vector<17xf32> to vector<17x1xf32>
    %57 = tpu.reciprocal %56 : vector<17x1xf32> -> vector<17x1xf32>
    %58 = vector.broadcast %57 : vector<17x1xf32> to vector<17x17xf32>
    %59 = arith.mulf %54, %58 : vector<17x17xf32>
    %60 = arith.truncf %59 : vector<17x17xf32> to vector<17x17xbf16>
    %cst_23 = arith.constant dense<0.000000e+00> : vector<17x32xf32>
    %61 = tpu.matmul %60, %48, %cst_23 {dimension_numbers = #tpu.dot_dimension_numbers<[1], [0], [0], [1], [0, 0, 1, 1], [], []>} : vector<17x17xbf16>, vector<17x32xbf16>, vector<17x32xf32> -> vector<17x32xf32>
    %62 = arith.truncf %61 : vector<17x32xf32> to vector<17x32xbf16>
    %c0_24 = arith.constant 0 : index
    %c0_25 = arith.constant 0 : index
    %c64 = arith.constant 64 : index
    %63 = vector.load %arg5[%c0_24, %c0_25, %c64] : memref<1x17x128xbf16, #tpu.memory_space<vmem>>, vector<1x17x32xbf16>
    %64 = vector.shape_cast %63 : vector<1x17x32xbf16> to vector<17x32xbf16>
    %65 = vector.shape_cast %62 : vector<17x32xbf16> to vector<1x17x32xbf16>
    tpu.vector_store %arg5[%c0_24, %c0_25, %c64], %65 {strides = array<i32>} : memref<1x17x128xbf16, #tpu.memory_space<vmem>>, vector<1x17x32xbf16>,
    %66 = vector.extract_strided_slice %1 {offsets = [0, 96], sizes = [17, 32], strides = [1, 1]} : vector<17x128xbf16> to vector<17x32xbf16>
    %67 = vector.extract_strided_slice %3 {offsets = [0, 96], sizes = [17, 32], strides = [1, 1]} : vector<17x128xbf16> to vector<17x32xbf16>
    %68 = vector.extract_strided_slice %5 {offsets = [0, 96], sizes = [17, 32], strides = [1, 1]} : vector<17x128xbf16> to vector<17x32xbf16>
    %cst_26 = arith.constant dense<0.000000e+00> : vector<17x17xf32>
    %69 = tpu.matmul %66, %67, %cst_26 {dimension_numbers = #tpu.dot_dimension_numbers<[1], [1], [0], [0], [0, 0, 1, 0], [], []>} : vector<17x32xbf16>, vector<17x32xbf16>, vector<17x17xf32> -> vector<17x17xf32>
    %cst_27 = arith.constant dense<0xFF800000> : vector<17xf32>
    %70 = vector.multi_reduction <maximumf>, %69, %cst_27 [1] : vector<17x17xf32> to vector<17xf32>
    %71 = vector.shape_cast %70 : vector<17xf32> to vector<17x1xf32>
    %72 = vector.broadcast %71 : vector<17x1xf32> to vector<17x17xf32>
    %73 = arith.subf %69, %72 : vector<17x17xf32>
    %74 = math.exp %73 : vector<17x17xf32>
    %cst_28 = arith.constant dense<0.000000e+00> : vector<17xf32>
    %75 = vector.multi_reduction <add>, %74, %cst_28 [1] : vector<17x17xf32> to vector<17xf32>
    %76 = vector.shape_cast %75 : vector<17xf32> to vector<17x1xf32>
    %77 = tpu.reciprocal %76 : vector<17x1xf32> -> vector<17x1xf32>
    %78 = vector.broadcast %77 : vector<17x1xf32> to vector<17x17xf32>
    %79 = arith.mulf %74, %78 : vector<17x17xf32>
    %80 = arith.truncf %79 : vector<17x17xf32> to vector<17x17xbf16>
    %cst_29 = arith.constant dense<0.000000e+00> : vector<17x32xf32>
    %81 = tpu.matmul %80, %68, %cst_29 {dimension_numbers = #tpu.dot_dimension_numbers<[1], [0], [0], [1], [0, 0, 1, 1], [], []>} : vector<17x17xbf16>, vector<17x32xbf16>, vector<17x32xf32> -> vector<17x32xf32>
    %82 = arith.truncf %81 : vector<17x32xf32> to vector<17x32xbf16>
    %c0_30 = arith.constant 0 : index
    %c0_31 = arith.constant 0 : index
    %c96 = arith.constant 96 : index
    %83 = vector.load %arg5[%c0_30, %c0_31, %c96] : memref<1x17x128xbf16, #tpu.memory_space<vmem>>, vector<1x17x32xbf16>
    %84 = vector.shape_cast %83 : vector<1x17x32xbf16> to vector<17x32xbf16>
    %85 = vector.shape_cast %82 : vector<17x32xbf16> to vector<1x17x32xbf16>
    tpu.vector_store %arg5[%c0_30, %c0_31, %c96], %85 {strides = array<i32>} : memref<1x17x128xbf16, #tpu.memory_space<vmem>>, vector<1x17x32xbf16>,
    return
  }
  func.func @transform_0(%arg0: i32, %arg1: i32) -> (i32, i32, i32) {
    %c0_i32 = arith.constant 0 : i32
    %c0_i32_0 = arith.constant 0 : i32
    return %arg0, %c0_i32, %arg1 : i32, i32, i32
  }
  func.func @transform_1(%arg0: i32, %arg1: i32) -> (i32, i32, i32) {
    %c1_i32 = arith.constant 1 : i32
    %0 = arith.addi %c1_i32, %arg1 : i32
    %c0_i32 = arith.constant 0 : i32
    %c0_i32_0 = arith.constant 0 : i32
    return %arg0, %c0_i32, %0 : i32, i32, i32
  }
  func.func @transform_2(%arg0: i32, %arg1: i32) -> (i32, i32, i32) {
    %c2_i32 = arith.constant 2 : i32
    %0 = arith.addi %c2_i32, %arg1 : i32
    %c0_i32 = arith.constant 0 : i32
    %c0_i32_0 = arith.constant 0 : i32
    return %arg0, %c0_i32, %0 : i32, i32, i32
  }
  func.func @transform_3(%arg0: i32, %arg1: i32) -> (i32, i32, i32) {
    %c0_i32 = arith.constant 0 : i32
    %c0_i32_0 = arith.constant 0 : i32
    return %arg0, %c0_i32, %arg1 : i32, i32, i32
  }
}

module attributes {stable_mosaic.version = 11 : i64} {
  func.func @_linear_kernel(%arg0: i32, %arg1: i32, %arg2: i32, %arg3: memref<34x128xf32, #tpu.memory_space<vmem>>, %arg4: memref<128x512xbf16, #tpu.memory_space<vmem>>, %arg5: memref<1x512xf32, #tpu.memory_space<vmem>>, %arg6: memref<1x128xf32, #tpu.memory_space<vmem>>, %arg7: memref<1x128xf32, #tpu.memory_space<vmem>>, %arg8: memref<34x512xbf16, #tpu.memory_space<vmem>>) attributes {dimension_semantics = [#tpu.dimension_semantics<parallel>, #tpu.dimension_semantics<parallel>, #tpu.dimension_semantics<arbitrary>], iteration_bounds = array<i64: 1, 1, 1>, scalar_prefetch = 0 : i64, scratch_operands = 0 : i64, tpu.core_type = #tpu.core_type<tc>, window_params = [{transform_indices = @transform_0, window_bounds = array<i64: 34, 128>}, {transform_indices = @transform_1, window_bounds = array<i64: 128, 512>}, {transform_indices = @transform_2, window_bounds = array<i64: 1, 512>}, {transform_indices = @transform_3, window_bounds = array<i64: 1, 128>}, {transform_indices = @transform_4, window_bounds = array<i64: 1, 128>}, {transform_indices = @transform_5, window_bounds = array<i64: 34, 512>}]} {
    %c0 = arith.constant 0 : index
    %c0_0 = arith.constant 0 : index
    %0 = vector.load %arg3[%c0, %c0_0] : memref<34x128xf32, #tpu.memory_space<vmem>>, vector<34x128xf32>
    %cst = arith.constant dense<0.000000e+00> : vector<34xf32>
    %1 = vector.multi_reduction <add>, %0, %cst [1] : vector<34x128xf32> to vector<34xf32>
    %2 = vector.shape_cast %1 : vector<34xf32> to vector<34x1xf32>
    %cst_1 = arith.constant 1.280000e+02 : f32
    %3 = vector.broadcast %cst_1 : f32 to vector<34x1xf32>
    %4 = arith.divf %2, %3 : vector<34x1xf32>
    %5 = vector.broadcast %4 : vector<34x1xf32> to vector<34x128xf32>
    %6 = arith.subf %0, %5 : vector<34x128xf32>
    %7 = vector.broadcast %4 : vector<34x1xf32> to vector<34x128xf32>
    %8 = arith.subf %0, %7 : vector<34x128xf32>
    %9 = arith.mulf %6, %8 : vector<34x128xf32>
    %cst_2 = arith.constant dense<0.000000e+00> : vector<34xf32>
    %10 = vector.multi_reduction <add>, %9, %cst_2 [1] : vector<34x128xf32> to vector<34xf32>
    %11 = vector.shape_cast %10 : vector<34xf32> to vector<34x1xf32>
    %cst_3 = arith.constant 1.280000e+02 : f32
    %12 = vector.broadcast %cst_3 : f32 to vector<34x1xf32>
    %13 = arith.divf %11, %12 : vector<34x1xf32>
    %14 = vector.broadcast %4 : vector<34x1xf32> to vector<34x128xf32>
    %15 = arith.subf %0, %14 : vector<34x128xf32>
    %cst_4 = arith.constant 9.99999996E-13 : f32
    %16 = vector.broadcast %cst_4 : f32 to vector<34x1xf32>
    %17 = arith.addf %13, %16 : vector<34x1xf32>
    %18 = math.rsqrt %17 : vector<34x1xf32>
    %19 = vector.broadcast %18 : vector<34x1xf32> to vector<34x128xf32>
    %20 = arith.mulf %15, %19 : vector<34x128xf32>
    %c0_5 = arith.constant 0 : index
    %c0_6 = arith.constant 0 : index
    %21 = vector.load %arg6[%c0_5, %c0_6] : memref<1x128xf32, #tpu.memory_space<vmem>>, vector<1x128xf32>
    %22 = vector.broadcast %21 : vector<1x128xf32> to vector<34x128xf32>
    %23 = arith.mulf %20, %22 : vector<34x128xf32>
    %c0_7 = arith.constant 0 : index
    %c0_8 = arith.constant 0 : index
    %24 = vector.load %arg7[%c0_7, %c0_8] : memref<1x128xf32, #tpu.memory_space<vmem>>, vector<1x128xf32>
    %25 = vector.broadcast %24 : vector<1x128xf32> to vector<34x128xf32>
    %26 = arith.addf %23, %25 : vector<34x128xf32>
    %27 = arith.truncf %26 : vector<34x128xf32> to vector<34x128xbf16>
    %c0_9 = arith.constant 0 : index
    %c0_10 = arith.constant 0 : index
    %28 = vector.load %arg4[%c0_9, %c0_10] : memref<128x512xbf16, #tpu.memory_space<vmem>>, vector<128x512xbf16>
    %cst_11 = arith.constant dense<0.000000e+00> : vector<34x512xf32>
    %29 = tpu.matmul %27, %28, %cst_11 {dimension_numbers = #tpu.dot_dimension_numbers<[1], [0], [0], [1], [0, 0, 1, 1], [], []>} : vector<34x128xbf16>, vector<128x512xbf16>, vector<34x512xf32> -> vector<34x512xf32>
    %c0_12 = arith.constant 0 : index
    %c0_13 = arith.constant 0 : index
    %30 = vector.load %arg5[%c0_12, %c0_13] : memref<1x512xf32, #tpu.memory_space<vmem>>, vector<1x512xf32>
    %31 = vector.broadcast %30 : vector<1x512xf32> to vector<34x512xf32>
    %32 = arith.addf %29, %31 : vector<34x512xf32>
    %cst_14 = arith.constant 5.000000e-01 : f32
    %33 = vector.broadcast %cst_14 : f32 to vector<34x512xf32>
    %34 = arith.mulf %33, %32 : vector<34x512xf32>
    %cst_15 = arith.constant 0.707106769 : f32
    %35 = vector.broadcast %cst_15 : f32 to vector<34x512xf32>
    %36 = arith.mulf %32, %35 : vector<34x512xf32>
    %37 = math.erf %36 : vector<34x512xf32>
    %cst_16 = arith.constant 1.000000e+00 : f32
    %38 = vector.broadcast %cst_16 : f32 to vector<34x512xf32>
    %39 = arith.addf %38, %37 : vector<34x512xf32>
    %40 = arith.mulf %34, %39 : vector<34x512xf32>
    %41 = arith.truncf %40 : vector<34x512xf32> to vector<34x512xbf16>
    %c0_17 = arith.constant 0 : index
    %c0_18 = arith.constant 0 : index
    %42 = vector.load %arg8[%c0_17, %c0_18] : memref<34x512xbf16, #tpu.memory_space<vmem>>, vector<34x512xbf16>
    tpu.vector_store %arg8[%c0_17, %c0_18], %41 {strides = array<i32>} : memref<34x512xbf16, #tpu.memory_space<vmem>>, vector<34x512xbf16>,
    return
  }
  func.func @transform_0(%arg0: i32, %arg1: i32, %arg2: i32) -> (i32, i32) {
    %c0_i32 = arith.constant 0 : i32
    return %arg0, %arg2 : i32, i32
  }
  func.func @transform_1(%arg0: i32, %arg1: i32, %arg2: i32) -> (i32, i32) {
    %c0_i32 = arith.constant 0 : i32
    return %arg2, %arg1 : i32, i32
  }
  func.func @transform_2(%arg0: i32, %arg1: i32, %arg2: i32) -> (i32, i32) {
    %c0_i32 = arith.constant 0 : i32
    %c0_i32_0 = arith.constant 0 : i32
    return %c0_i32, %arg1 : i32, i32
  }
  func.func @transform_3(%arg0: i32, %arg1: i32, %arg2: i32) -> (i32, i32) {
    %c0_i32 = arith.constant 0 : i32
    %c0_i32_0 = arith.constant 0 : i32
    return %c0_i32, %arg2 : i32, i32
  }
  func.func @transform_4(%arg0: i32, %arg1: i32, %arg2: i32) -> (i32, i32) {
    %c0_i32 = arith.constant 0 : i32
    %c0_i32_0 = arith.constant 0 : i32
    return %c0_i32, %arg2 : i32, i32
  }
  func.func @transform_5(%arg0: i32, %arg1: i32, %arg2: i32) -> (i32, i32) {
    %c0_i32 = arith.constant 0 : i32
    return %arg0, %arg1 : i32, i32
  }
}

module attributes {stable_mosaic.version = 11 : i64} {
  func.func @_linear_kernel(%arg0: i32, %arg1: i32, %arg2: i32, %arg3: memref<34x512xbf16, #tpu.memory_space<vmem>>, %arg4: memref<512x128xbf16, #tpu.memory_space<vmem>>, %arg5: memref<1x128xf32, #tpu.memory_space<vmem>>, %arg6: memref<34x128xf32, #tpu.memory_space<vmem>>, %arg7: memref<34x128xf32, #tpu.memory_space<vmem>>) attributes {dimension_semantics = [#tpu.dimension_semantics<parallel>, #tpu.dimension_semantics<parallel>, #tpu.dimension_semantics<arbitrary>], iteration_bounds = array<i64: 1, 1, 1>, scalar_prefetch = 0 : i64, scratch_operands = 0 : i64, tpu.core_type = #tpu.core_type<tc>, window_params = [{transform_indices = @transform_0, window_bounds = array<i64: 34, 512>}, {transform_indices = @transform_1, window_bounds = array<i64: 512, 128>}, {transform_indices = @transform_2, window_bounds = array<i64: 1, 128>}, {transform_indices = @transform_3, window_bounds = array<i64: 34, 128>}, {transform_indices = @transform_4, window_bounds = array<i64: 34, 128>}]} {
    %c0 = arith.constant 0 : index
    %c0_0 = arith.constant 0 : index
    %0 = vector.load %arg3[%c0, %c0_0] : memref<34x512xbf16, #tpu.memory_space<vmem>>, vector<34x512xbf16>
    %c0_1 = arith.constant 0 : index
    %c0_2 = arith.constant 0 : index
    %1 = vector.load %arg4[%c0_1, %c0_2] : memref<512x128xbf16, #tpu.memory_space<vmem>>, vector<512x128xbf16>
    %cst = arith.constant dense<0.000000e+00> : vector<34x128xf32>
    %2 = tpu.matmul %0, %1, %cst {dimension_numbers = #tpu.dot_dimension_numbers<[1], [0], [0], [1], [0, 0, 1, 1], [], []>} : vector<34x512xbf16>, vector<512x128xbf16>, vector<34x128xf32> -> vector<34x128xf32>
    %c0_3 = arith.constant 0 : index
    %c0_4 = arith.constant 0 : index
    %3 = vector.load %arg5[%c0_3, %c0_4] : memref<1x128xf32, #tpu.memory_space<vmem>>, vector<1x128xf32>
    %4 = vector.broadcast %3 : vector<1x128xf32> to vector<34x128xf32>
    %5 = arith.addf %2, %4 : vector<34x128xf32>
    %c0_5 = arith.constant 0 : index
    %c0_6 = arith.constant 0 : index
    %6 = vector.load %arg6[%c0_5, %c0_6] : memref<34x128xf32, #tpu.memory_space<vmem>>, vector<34x128xf32>
    %7 = arith.addf %5, %6 : vector<34x128xf32>
    %c0_7 = arith.constant 0 : index
    %c0_8 = arith.constant 0 : index
    %8 = vector.load %arg7[%c0_7, %c0_8] : memref<34x128xf32, #tpu.memory_space<vmem>>, vector<34x128xf32>
    tpu.vector_store %arg7[%c0_7, %c0_8], %7 {strides = array<i32>} : memref<34x128xf32, #tpu.memory_space<vmem>>, vector<34x128xf32>,
    return
  }
  func.func @transform_0(%arg0: i32, %arg1: i32, %arg2: i32) -> (i32, i32) {
    %c0_i32 = arith.constant 0 : i32
    return %arg0, %arg2 : i32, i32
  }
  func.func @transform_1(%arg0: i32, %arg1: i32, %arg2: i32) -> (i32, i32) {
    %c0_i32 = arith.constant 0 : i32
    return %arg2, %arg1 : i32, i32
  }
  func.func @transform_2(%arg0: i32, %arg1: i32, %arg2: i32) -> (i32, i32) {
    %c0_i32 = arith.constant 0 : i32
    %c0_i32_0 = arith.constant 0 : i32
    return %c0_i32, %arg1 : i32, i32
  }
  func.func @transform_3(%arg0: i32, %arg1: i32, %arg2: i32) -> (i32, i32) {
    %c0_i32 = arith.constant 0 : i32
    return %arg0, %arg1 : i32, i32
  }
  func.func @transform_4(%arg0: i32, %arg1: i32, %arg2: i32) -> (i32, i32) {
    %c0_i32 = arith.constant 0 : i32
    return %arg0, %arg1 : i32, i32
  }
}

module attributes {stable_mosaic.version = 11 : i64} {
  func.func @_pool_kernel(%arg0: i32, %arg1: memref<1x17x128xf32, #tpu.memory_space<vmem>>, %arg2: memref<1x1x128xf32, #tpu.memory_space<vmem>>) attributes {dimension_semantics = [#tpu.dimension_semantics<parallel>], iteration_bounds = array<i64: 2>, scalar_prefetch = 0 : i64, scratch_operands = 0 : i64, tpu.core_type = #tpu.core_type<tc>, window_params = [{transform_indices = @transform_0, window_bounds = array<i64: 1, 17, 128>}, {transform_indices = @transform_1, window_bounds = array<i64: 1, 1, 128>}]} {
    %c0 = arith.constant 0 : index
    %c0_0 = arith.constant 0 : index
    %c0_1 = arith.constant 0 : index
    %0 = vector.load %arg1[%c0, %c0_0, %c0_1] : memref<1x17x128xf32, #tpu.memory_space<vmem>>, vector<1x17x128xf32>
    %1 = vector.shape_cast %0 : vector<1x17x128xf32> to vector<17x128xf32>
    %cst = arith.constant dense<0.000000e+00> : vector<128xf32>
    %2 = vector.multi_reduction <add>, %1, %cst [0] : vector<17x128xf32> to vector<128xf32>
    %cst_2 = arith.constant 1.700000e+01 : f32
    %3 = vector.broadcast %cst_2 : f32 to vector<128xf32>
    %4 = arith.divf %2, %3 : vector<128xf32>
    %5 = vector.shape_cast %4 : vector<128xf32> to vector<1x1x128xf32>
    %c0_3 = arith.constant 0 : index
    %c0_4 = arith.constant 0 : index
    %c0_5 = arith.constant 0 : index
    %6 = vector.load %arg2[%c0_3, %c0_4, %c0_5] : memref<1x1x128xf32, #tpu.memory_space<vmem>>, vector<1x1x128xf32>
    tpu.vector_store %arg2[%c0_3, %c0_4, %c0_5], %5 {strides = array<i32>} : memref<1x1x128xf32, #tpu.memory_space<vmem>>, vector<1x1x128xf32>,
    return
  }
  func.func @transform_0(%arg0: i32) -> (i32, i32, i32) {
    %c0_i32 = arith.constant 0 : i32
    %c0_i32_0 = arith.constant 0 : i32
    %c0_i32_1 = arith.constant 0 : i32
    return %arg0, %c0_i32, %c0_i32_0 : i32, i32, i32
  }
  func.func @transform_1(%arg0: i32) -> (i32, i32, i32) {
    %c0_i32 = arith.constant 0 : i32
    %c0_i32_0 = arith.constant 0 : i32
    %c0_i32_1 = arith.constant 0 : i32
    return %arg0, %c0_i32, %c0_i32_0 : i32, i32, i32
  }
}

</mosaic_0001>

<bundles_post_ra>
// kernel: vit_backbone_forward.12
= control target key start
LH: loop header
LB: loop body
LE: loop exit
PB: predicated region body
PF: predicated region fallthrough
CT: control target
= control target key end

     0   :  { %v246_v0 = vmov 0   ;;  %vm130_vm0 = vcmask 523264   ;;  %s366_s1 = inlined_call_operand.vmem [shape: bf16[192,128], index: 1, kind: input, shape index: {}]   ;;  %s367_s0 = inlined_call_operand.vmem [shape: f32[32,192], index: 0, kind: input, shape index: {}]   ;;  %s368_s2 = inlined_call_operand.vmem [shape: f32[1,128], index: 2, kind: input, shape index: {}]   ;;  %s369_s3 = inlined_call_operand.vmem [shape: f32[32,128], index: 3, kind: output, shape index: {}]  }
   0x1   :  { %137 = vmatprep.subr.bf16.mxu0 %v246_v0  ;;  %209 = vmatprep.subr.bf16.mxu1 %v246_v0  ;;  %v234_v1 = vld [vmem:[%s366_s1 + $0x38] sm:$0xff]   ;;  %v235_v2 = vld [vmem:[%s366_s1 + $0x30] sm:$0xff]   ;;  %v236_v3 = vld [vmem:[%s366_s1 + $0x28] sm:$0xff]  }
   0x2   :  { %138 = vmatpush1.bf16.msra.mxu0 %v234_v1  ;;  %221 = vmatpush1.bf16.msra.mxu1 %v234_v1  ;;  %v237_v4 = vld [vmem:[%s366_s1 + $0x20] sm:$0xff]   ;;  %v16_v5 = vld [vmem:[%s367_s0 + $0x8] sm:$0xff]  ;;  %v18_v6 = vld [vmem:[%s367_s0 + $0x18] sm:$0xff] }
   0x3   :  { %139 = vmatprep.subr.bf16.mxu0 %v246_v0  ;;  %210 = vmatprep.subr.bf16.mxu1 %v246_v0  ;;  %v20_v7 = vld [vmem:[%s367_s0 + $0x28] sm:$0xff]  ;;  %v24_v8 = vpack.c.bf16 %v18_v6, %v16_v5  ;;  %v22_v9 = vld [vmem:[%s367_s0 + $0x38] sm:$0xff]  ;;  %v239_v12 = vld [vmem:[%s366_s1 + $0x10] sm:$0xff]  }
   0x4   :  { %v238_v10 = vld [vmem:[%s366_s1 + $0x18] sm:$0xff]   ;;  %v26_v11 = vpack.c.bf16 %v22_v9, %v20_v7  ;;  %v240_v13 = vld [vmem:[%s366_s1 + $0x8] sm:$0xff]   ;;  %v241_v14 = vld [vmem:[%s366_s1] sm:$0xff]  }
   0x5   :  { %207 = vmatprep.mubr.msk.bf16.mxu0 %vm130_vm0, %v24_v8  ;;  %v242_v15 = vld [vmem:[%s366_s1 + $0x58] sm:$0xff]   ;;  %v243_v16 = vld [vmem:[%s366_s1 + $0x50] sm:$0xff]   ;;  %v244_v17 = vld [vmem:[%s366_s1 + $0x48] sm:$0xff]  }
   0x6   :  { %140 = vmatpush1.bf16.msra.mxu0 %v235_v2  ;;  %222 = vmatpush1.bf16.msra.mxu1 %v235_v2  ;;  %v245_v18 = vld [vmem:[%s366_s1 + $0x40] sm:$0xff]   ;;  %v17_v20 = vld [vmem:[%s367_s0 + $0x10] sm:$0xff] }
   0x7   :  { %141 = vmatprep.subr.bf16.mxu0 %v246_v0  ;;  %211 = vmatprep.subr.bf16.mxu1 %v246_v0  ;;  %v15_v19 = vld [vmem:[%s367_s0] sm:$0xff]  ;;  %v21_v22 = vld [vmem:[%s367_s0 + $0x30] sm:$0xff] }
   0x8   :  { %208 = vmatprep.mubr.msk.bf16.mxu1 %vm130_vm0, %v26_v11  ;;  %v19_v21 = vld [vmem:[%s367_s0 + $0x20] sm:$0xff]  ;;  %v23_v23 = vpack.c.bf16 %v17_v20, %v15_v19 }
   0x9   :  { %v25_v24 = vpack.c.bf16 %v21_v22, %v19_v21  ;;  %v194_v25 = vld [vmem:[%s368_s2] ss:$0 sm:$0xff] }
   0xa   :  { %142 = vmatpush1.bf16.msra.mxu0 %v236_v3  ;;  %223 = vmatpush1.bf16.msra.mxu1 %v236_v3 }
   0xb   :  { %143 = vmatprep.subr.bf16.mxu0 %v246_v0  ;;  %212 = vmatprep.subr.bf16.mxu1 %v246_v0 }
   0xe   :  { %144 = vmatpush1.bf16.msra.mxu0 %v237_v4  ;;  %224 = vmatpush1.bf16.msra.mxu1 %v237_v4 }
   0xf   :  { %145 = vmatprep.subr.bf16.mxu0 %v246_v0  ;;  %213 = vmatprep.subr.bf16.mxu1 %v246_v0 }
  0x12   :  { %146 = vmatpush1.bf16.msra.mxu0 %v238_v10  ;;  %225 = vmatpush1.bf16.msra.mxu1 %v238_v10 }
  0x13   :  { %147 = vmatprep.subr.bf16.mxu0 %v246_v0  ;;  %214 = vmatprep.subr.bf16.mxu1 %v246_v0 }
  0x16   :  { %148 = vmatpush1.bf16.msra.mxu0 %v239_v12  ;;  %226 = vmatpush1.bf16.msra.mxu1 %v239_v12 }
  0x17   :  { %149 = vmatprep.subr.bf16.mxu0 %v246_v0  ;;  %215 = vmatprep.subr.bf16.mxu1 %v246_v0 }
  0x1a   :  { %150 = vmatpush1.bf16.msra.mxu0 %v240_v13  ;;  %227 = vmatpush1.bf16.msra.mxu1 %v240_v13 }
  0x1b   :  { %151 = vmatprep.subr.bf16.mxu0 %v246_v0  ;;  %216 = vmatprep.subr.bf16.mxu1 %v246_v0 }
  0x1e   :  { %152 = vmatpush1.bf16.msra.mxu0 %v241_v14  ;;  %228 = vmatpush1.bf16.msra.mxu1 %v241_v14 }
  0x1f   :  { %161 = vmatprep.subr.bf16.mxu0 %v246_v0  ;;  %217 = vmatprep.subr.bf16.mxu1 %v246_v0 }
  0x22   :  { %162 = vmatpush2.bf16.msra.mxu0 %v242_v15  ;;  %229 = vmatpush2.bf16.msra.mxu1 %v242_v15 }
  0x23   :  { %163 = vmatprep.subr.bf16.mxu0 %v246_v0  ;;  %218 = vmatprep.subr.bf16.mxu1 %v246_v0 }
  0x26   :  { %164 = vmatpush2.bf16.msra.mxu0 %v243_v16  ;;  %230 = vmatpush2.bf16.msra.mxu1 %v243_v16 }
  0x27   :  { %165 = vmatprep.subr.bf16.mxu0 %v246_v0  ;;  %219 = vmatprep.subr.bf16.mxu1 %v246_v0 }
  0x2a   :  { %166 = vmatpush2.bf16.msra.mxu0 %v244_v17  ;;  %231 = vmatpush2.bf16.msra.mxu1 %v244_v17 }
  0x2b   :  { %167 = vmatprep.subr.bf16.mxu0 %v246_v0  ;;  %220 = vmatprep.subr.bf16.mxu1 %v246_v0 }
  0x2e   :  { %168 = vmatpush2.bf16.msra.mxu0 %v245_v18  ;;  %232 = vmatpush2.bf16.msra.mxu1 %v245_v18 }
  0x31   :  { %170 = vmatmul.mubr.bf16.vlgmr.msra.gmra.mxu0 %v23_v23  ;;  %178 = vmatmul.mubr.bf16.vlgmr.msra.gmra.mxu1 %v25_v24 }
  0xf1   :  { %v171_v26 = vpop.f32.mrf.mxu0  ;;  %v179_v27 = vpop.f32.mrf.mxu1 }
  0xf2   :  { %v172_v28 = vadd.f32 %v194_v25, %v171_v26  ;;  %v180_v29 = vadd.f32 %v194_v25, %v179_v27 }
  0xf3   :  { %v173_v30 = vpop.f32.mrf.mxu0  ;;  %v181_v31 = vpop.f32.mrf.mxu1 }
  0xf4   :  { %186 = vst [vmem:[%s369_s3] sm:$0xff] %v172_v28  ;;  %188 = vst [vmem:[%s369_s3 + $0x10] sm:$0xff] %v180_v29 }
  0xf5   :  { %v174_v32 = vpop.f32.mrf.mxu0  ;;  %v182_v33 = vpop.f32.mrf.mxu1 }
  0xf6   :  { %v175_v34 = vadd.f32 %v194_v25, %v174_v32  ;;  %v183_v35 = vadd.f32 %v194_v25, %v182_v33 }
  0xf7   :  { %v176_v36 = vpop.f32.mrf.mxu0  ;;  %v184_v37 = vpop.f32.mrf.mxu1 }
  0xf8   :  { %187 = vst [vmem:[%s369_s3 + $0x8] sm:$0xff] %v175_v34  ;;  %189 = vst [vmem:[%s369_s3 + $0x18] sm:$0xff] %v183_v35 }

// kernel: vit_backbone_forward.15
= control target key start
LH: loop header
LB: loop body
LE: loop exit
PB: predicated region body
PF: predicated region fallthrough
CT: control target
= control target key end

     0   :  { %v265_v0 = vmov 0.0   ;;  %vm266_vm0 = vmmov 0   ;;  %s361_s1 = inlined_call_operand.vmem [shape: bf16[128,128], index: 1, kind: input, shape index: {}]   ;;  %s362_s0 = inlined_call_operand.vmem [shape: bf16[34,128], index: 0, kind: input, shape index: {}]   ;;  %s363_s2 = inlined_call_operand.vmem [shape: f32[1,128], index: 2, kind: input, shape index: {}]   ;;  %s364_s3 = inlined_call_operand.vmem [shape: f32[34,128], index: 3, kind: input, shape index: {}, may-alias: {3,4}]   ;;  %s365_s4 = inlined_call_operand.vmem [shape: f32[34,128], index: 4, kind: output, shape index: {}, may-alias: {3,4}]  }
   0x1   :  { %208 = vmatprep.subr.bf16.mxu0 %v265_v0  ;;  %236 = vmatprep.subr.bf16.mxu1 %v265_v0  ;;  %v254_v1 = vld [vmem:[%s361_s1 + $0x38] sm:$0xff]   ;;  %v255_v2 = vld [vmem:[%s361_s1 + $0x30] sm:$0xff]   ;;  %v256_v3 = vld [vmem:[%s361_s1 + $0x28] sm:$0xff]  }
   0x2   :  { %224 = vmatprep.mubr.msk.bf16.mxu0 %vm266_vm0, %v265_v0  ;;  %228 = vmatprep.mubr.msk.bf16.mxu1 %vm266_vm0, %v265_v0  ;;  %v257_v4 = vld [vmem:[%s361_s1 + $0x20] sm:$0xff]   ;;  %v258_v5 = vld [vmem:[%s361_s1 + $0x18] sm:$0xff]   ;;  %v259_v6 = vld [vmem:[%s361_s1 + $0x10] sm:$0xff]  }
   0x3   :  { %209 = vmatpush3.bf16.msra.mxu0 %v254_v1  ;;  %244 = vmatpush3.bf16.msra.mxu1 %v254_v1  ;;  %v260_v7 = vld [vmem:[%s361_s1 + $0x8] sm:$0xff]   ;;  %v261_v8 = vld [vmem:[%s361_s1] sm:$0xff]   ;;  %v264_v11 = vld [vmem:[%s362_s0 + $0x10] ss:$0 sps:$4 sm:$0x11]  }
   0x4   :  { %210 = vmatprep.subr.bf16.mxu0 %v265_v0  ;;  %237 = vmatprep.subr.bf16.mxu1 %v265_v0  ;;  %v262_v9 = vld [vmem:[%s362_s0] sm:$0xff]   ;;  %v263_v10 = vld [vmem:[%s362_s0 + $0x8] sm:$0xff]   ;;  %v168_v16 = vld [vmem:[%s364_s3 + $0x10] sm:$0xff] }
   0x5   :  { %v185_v12 = vld [vmem:[%s363_s2] ss:$0 sm:$0xff]  ;;  %v167_v24 = vld [vmem:[%s364_s3 + $0x8] sm:$0xff]  ;;  %v169_v26 = vld [vmem:[%s364_s3 + $0x18] sm:$0xff] }
   0x6   :  { %v166_v14 = vld [vmem:[%s364_s3] sm:$0xff] }
   0x7   :  { %211 = vmatpush3.bf16.msra.mxu0 %v255_v2  ;;  %245 = vmatpush3.bf16.msra.mxu1 %v255_v2 }
   0x8   :  { %212 = vmatprep.subr.bf16.mxu0 %v265_v0  ;;  %238 = vmatprep.subr.bf16.mxu1 %v265_v0 }
   0xb   :  { %213 = vmatpush3.bf16.msra.mxu0 %v256_v3  ;;  %246 = vmatpush3.bf16.msra.mxu1 %v256_v3 }
   0xc   :  { %214 = vmatprep.subr.bf16.mxu0 %v265_v0  ;;  %239 = vmatprep.subr.bf16.mxu1 %v265_v0 }
   0xf   :  { %215 = vmatpush3.bf16.msra.mxu0 %v257_v4  ;;  %247 = vmatpush3.bf16.msra.mxu1 %v257_v4 }
  0x10   :  { %216 = vmatprep.subr.bf16.mxu0 %v265_v0  ;;  %240 = vmatprep.subr.bf16.mxu1 %v265_v0 }
  0x13   :  { %217 = vmatpush3.bf16.msra.mxu0 %v258_v5  ;;  %248 = vmatpush3.bf16.msra.mxu1 %v258_v5 }
  0x14   :  { %218 = vmatprep.subr.bf16.mxu0 %v265_v0  ;;  %241 = vmatprep.subr.bf16.mxu1 %v265_v0 }
  0x17   :  { %219 = vmatpush3.bf16.msra.mxu0 %v259_v6  ;;  %249 = vmatpush3.bf16.msra.mxu1 %v259_v6 }
  0x18   :  { %220 = vmatprep.subr.bf16.mxu0 %v265_v0  ;;  %242 = vmatprep.subr.bf16.mxu1 %v265_v0 }
  0x1b   :  { %221 = vmatpush3.bf16.msra.mxu0 %v260_v7  ;;  %250 = vmatpush3.bf16.msra.mxu1 %v260_v7 }
  0x1c   :  { %222 = vmatprep.subr.bf16.mxu0 %v265_v0  ;;  %243 = vmatprep.subr.bf16.mxu1 %v265_v0 }
  0x1f   :  { %223 = vmatpush3.bf16.msra.mxu0 %v261_v8  ;;  %251 = vmatpush3.bf16.msra.mxu1 %v261_v8 }
  0x22   :  { %225 = vmatmul.mubr.bf16.vlgmr.msra.gmra.mxu0 %v262_v9  ;;  %229 = vmatmul.mubr.bf16.vlgmr.msra.gmra.mxu1 %v263_v10 }
  0x23   :  { %232 = vmatprep.mubr.msk.bf16.mxu1 %vm266_vm0, %v265_v0 }
  0x2a   :  { %233 = vmatmul.mubr.bf16.gmra.mxu1 %v264_v11 }
  0xe2   :  { %v144_v13 = vpop.f32.mrf.mxu0  ;;  %v152_v15 = vpop.f32.mrf.mxu1 }
  0xe3   :  { %v145_v17 = vadd.f32 %v185_v12, %v144_v13  ;;  %v153_v18 = vadd.f32 %v185_v12, %v152_v15 }
  0xe4   :  { %v226_v19 = vpop.f32.mrf.mxu0  ;;  %v230_v20 = vpop.f32.mrf.mxu1 }
  0xe5   :  { %v171_v21 = vadd.f32 %v166_v14, %v145_v17  ;;  %v173_v22 = vadd.f32 %v168_v16, %v153_v18 }
  0xe6   :  { %v147_v23 = vpop.f32.mrf.mxu0  ;;  %v155_v25 = vpop.f32.mrf.mxu1 }
  0xe7   :  { %176 = vst [vmem:[%s365_s4] sm:$0xff] %v171_v21  ;;  %178 = vst [vmem:[%s365_s4 + $0x10] sm:$0xff] %v173_v22  ;;  %v148_v27 = vadd.f32 %v185_v12, %v147_v23  ;;  %v156_v28 = vadd.f32 %v185_v12, %v155_v25 }
  0xe8   :  { %v227_v29 = vpop.f32.mrf.mxu0  ;;  %v231_v30 = vpop.f32.mrf.mxu1 }
  0xe9   :  { %v172_v31 = vadd.f32 %v167_v24, %v148_v27  ;;  %v174_v32 = vadd.f32 %v169_v26, %v156_v28 }
  0xea   :  { %v160_v33 = vpop.f32.mrf.mxu1 }
  0xeb   :  { %v161_v35 = vadd.f32 %v185_v12, %v160_v33 }
  0xec   :  { %v234_v36 = vpop.f32.mrf.mxu1 }
  0xee   :  { %v170_v34 = vld [vmem:[%s364_s3 + $0x20] sm:$0x3]  ;;  %v163_v38 = vpop.f32.mrf.mxu1 }
  0xef   :  { %177 = vst [vmem:[%s365_s4 + $0x8] sm:$0xff] %v172_v31  ;;  %179 = vst [vmem:[%s365_s4 + $0x18] sm:$0xff] %v174_v32  ;;  %v175_v37 = vadd.f32 %v170_v34, %v161_v35 }
  0xf0   :  { %v235_v39 = vpop.f32.mrf.mxu1 }
  0xf1   :  { %180 = vst [vmem:[%s365_s4 + $0x20] sm:$0x3] %v175_v37 }

// kernel: vit_backbone_forward.13
= control target key start
LH: loop header
LB: loop body
LE: loop exit
PB: predicated region body
PF: predicated region fallthrough
CT: control target
= control target key end

     0   :  { %vm34_vm0 = vcmask 1041408   ;;  %v603_v7 = vmov 0.0   ;;  %v604_v47 = vmov 0   ;;  %vm605_vm1 = vmmov 0   ;;  %s806_s0 = inlined_call_operand.vmem [shape: f32[34,128], index: 0, kind: input, shape index: {}]   ;;  %s807_s1 = inlined_call_operand.vmem [shape: bf16[128,384], index: 1, kind: input, shape index: {}]   ;;  %s808_s3 = inlined_call_operand.vmem [shape: f32[1,128], index: 3, kind: input, shape index: {}]   ;;  %s809_s4 = inlined_call_operand.vmem [shape: f32[1,128], index: 4, kind: input, shape index: {}]   ;;  %s810_s2 = inlined_call_operand.vmem [shape: f32[1,384], index: 2, kind: input, shape index: {}]   ;;  %s811_s5 = inlined_call_operand.vmem [shape: bf16[34,384], index: 5, kind: output, shape index: {}]  }
   0x1   :  { %v21_v0 = vld [vmem:[%s806_s0] sm:$0xff]  ;;  %v23_v1 = vld [vmem:[%s806_s0 + $0x10] sm:$0xff]  ;;  %v22_v2 = vld [vmem:[%s806_s0 + $0x8] sm:$0xff]  ;;  %530 = vmatprep.subr.bf16.mxu1 %v603_v7  ;;  %321 = vmatprep.mubr.bf16.mxu0 %v604_v47 }
   0x2   :  { %26 = vadd.xlane.f32.xlu0 %v21_v0  ;;  %30 = vadd.xlane.f32.xlu1 %v23_v1  ;;  %v24_v3 = vld [vmem:[%s806_s0 + $0x18] sm:$0xff]  ;;  %v25_v4 = vld [vmem:[%s806_s0 + $0x20] sm:$0x3]  ;;  %v563_v8 = vld [vmem:[%s807_s1 + $0xa8] ss:$12 sps:$4 sm:$0xff]  }
   0x3   :  { %v35_v5 = vsel %vm34_vm0, %v25_v4, 0.0  ;;  %v561_v6 = vld [vmem:[%s807_s1 + $0xac] ss:$12 sps:$4 sm:$0xff]   ;;  %v564_v9 = vld [vmem:[%s807_s1 + $0xb0] ss:$12 sps:$4 sm:$0xff]   ;;  %546 = vmatprep.mubr.msk.bf16.mxu1 %vm605_vm1, %v603_v7 }
   0x4   :  { %289 = vmatprep.subr.bf16.mxu0 %v561_v6  ;;  %531 = vmatpush3.bf16.msra.mxu1 %v564_v9  ;;  %v565_v31 = vld [vmem:[%s807_s1 + $0x94] ss:$12 sps:$4 sm:$0xff]   ;;  %v567_v32 = vld [vmem:[%s807_s1 + $0x90] ss:$12 sps:$4 sm:$0xff]   ;;  %v568_v33 = vld [vmem:[%s807_s1 + $0x98] ss:$12 sps:$4 sm:$0xff]  }
   0x5   :  { %290 = vmatpush1.bf16.msra.mxu0 %v563_v8  ;;  %532 = vmatprep.subr.bf16.mxu1 %v603_v7  ;;  %v569_v34 = vld [vmem:[%s807_s1 + $0x7c] ss:$12 sps:$4 sm:$0xff]   ;;  %v571_v35 = vld [vmem:[%s807_s1 + $0x78] ss:$12 sps:$4 sm:$0xff]   ;;  %v572_v36 = vld [vmem:[%s807_s1 + $0x80] ss:$12 sps:$4 sm:$0xff]  }
   0x6   :  { %28 = vadd.xlane.f32.xlu0 %v22_v2  ;;  %32 = vadd.xlane.f32.xlu1 %v24_v3  ;;  %v573_v37 = vld [vmem:[%s807_s1 + $0x64] ss:$12 sps:$4 sm:$0xff]   ;;  %v575_v38 = vld [vmem:[%s807_s1 + $0x60] ss:$12 sps:$4 sm:$0xff]   ;;  %v576_v39 = vld [vmem:[%s807_s1 + $0x68] ss:$12 sps:$4 sm:$0xff]  }
   0x7   :  { %291 = vmatprep.subr.bf16.mxu0 %v565_v31  ;;  %v577_v40 = vld [vmem:[%s807_s1 + $0x4c] ss:$12 sps:$4 sm:$0xff]   ;;  %v579_v41 = vld [vmem:[%s807_s1 + $0x48] ss:$12 sps:$4 sm:$0xff]   ;;  %v580_v42 = vld [vmem:[%s807_s1 + $0x50] ss:$12 sps:$4 sm:$0xff]   ;;  %v146_v31 = vlaneseq }
   0x8   :  { %533 = vmatpush3.bf16.msra.mxu1 %v568_v33  ;;  %v581_v43 = vld [vmem:[%s807_s1 + $0x34] ss:$12 sps:$4 sm:$0xff]   ;;  %v583_v44 = vld [vmem:[%s807_s1 + $0x30] ss:$12 sps:$4 sm:$0xff]   ;;  %v584_v45 = vld [vmem:[%s807_s1 + $0x38] ss:$12 sps:$4 sm:$0xff]  }
   0x9   :  { %292 = vmatpush1.bf16.msra.mxu0 %v567_v32  ;;  %534 = vmatprep.subr.bf16.mxu1 %v603_v7  ;;  %v585_v46 = vld [vmem:[%s807_s1 + $0x1c] ss:$12 sps:$4 sm:$0xff]   ;;  %v587_v48 = vld [vmem:[%s807_s1 + $0x18] ss:$12 sps:$4 sm:$0xff]   ;;  %v588_v49 = vld [vmem:[%s807_s1 + $0x20] ss:$12 sps:$4 sm:$0xff]  }
   0xa   :  { %36 = vadd.xlane.f32.xlu0 %v35_v5  ;;  %293 = vmatprep.subr.bf16.mxu0 %v569_v34  ;;  %v589_v50 = vld [vmem:[%s807_s1 + $0x4] ss:$12 sps:$4 sm:$0xff]   ;;  %v591_v51 = vld [vmem:[%s807_s1] ss:$12 sps:$4 sm:$0xff]   ;;  %v592_v52 = vld [vmem:[%s807_s1 + $0x8] ss:$12 sps:$4 sm:$0xff]  }
   0xb   :  { %v473_v6 = vld [vmem:[%s808_s3] ss:$0 sm:$0xff]  ;;  %v147_v32 = vshrl.u32 %v146_v31, 7 }
   0xc   :  { %535 = vmatpush3.bf16.msra.mxu1 %v572_v36 }
   0xd   :  { %294 = vmatpush1.bf16.msra.mxu0 %v571_v35  ;;  %536 = vmatprep.subr.bf16.mxu1 %v603_v7  ;;  %v156_v33 = vsub.s32 2, %v147_v32  ;;  %v148_v34 = vsub.s32 0, %v147_v32  ;;  %v152_v35 = vsub.s32 1, %v147_v32 }
   0xe   :  { %295 = vmatprep.subr.bf16.mxu0 %v573_v37 }
  0x10   :  { %537 = vmatpush3.bf16.msra.mxu1 %v576_v39 }
  0x11   :  { %296 = vmatpush1.bf16.msra.mxu0 %v575_v38  ;;  %538 = vmatprep.subr.bf16.mxu1 %v603_v7 }
  0x12   :  { %297 = vmatprep.subr.bf16.mxu0 %v577_v40 }
  0x14   :  { %539 = vmatpush3.bf16.msra.mxu1 %v580_v42 }
  0x15   :  { %298 = vmatpush1.bf16.msra.mxu0 %v579_v41  ;;  %540 = vmatprep.subr.bf16.mxu1 %v603_v7 }
  0x16   :  { %299 = vmatprep.subr.bf16.mxu0 %v581_v43 }
  0x18   :  { %541 = vmatpush3.bf16.msra.mxu1 %v584_v45 }
  0x19   :  { %300 = vmatpush1.bf16.msra.mxu0 %v583_v44  ;;  %542 = vmatprep.subr.bf16.mxu1 %v603_v7 }
  0x1a   :  { %301 = vmatprep.subr.bf16.mxu0 %v585_v46 }
  0x1c   :  { %543 = vmatpush3.bf16.msra.mxu1 %v588_v49 }
  0x1d   :  { %302 = vmatpush1.bf16.msra.mxu0 %v587_v48  ;;  %544 = vmatprep.subr.bf16.mxu1 %v603_v7 }
  0x1e   :  { %303 = vmatprep.subr.bf16.mxu0 %v589_v50 }
  0x20   :  { %545 = vmatpush3.bf16.msra.mxu1 %v592_v52 }
  0x21   :  { %304 = vmatpush1.bf16.msra.mxu0 %v591_v51 }
  0x8b   :  { %v27_v10 = vpop.xlane.xlu0 %26  ;;  %v31_v11 = vpop.xlane.xlu1 %30 }
  0x8c   :  { %v39_v12 = vmul.f32 0.0078125, %v27_v10  ;;  %v41_v13 = vmul.f32 0.0078125, %v31_v11 }
  0x8e   :  { %v663_v14 = vsub.f32 %v21_v0, %v39_v12  ;;  %v665_v15 = vsub.f32 %v23_v1, %v41_v13  ;;  %v474_v12 = vld [vmem:[%s809_s4] ss:$0 sm:$0xff] }
  0x8f   :  { %v29_v16 = vpop.xlane.xlu0 %28  ;;  %v33_v17 = vpop.xlane.xlu1 %32 }
  0x90   :  { %v40_v18 = vmul.f32 0.0078125, %v29_v16  ;;  %v49_v19 = vmul.f32 %v663_v14, %v663_v14  ;;  %v42_v20 = vmul.f32 0.0078125, %v33_v17  ;;  %v51_v23 = vmul.f32 %v665_v15, %v665_v15 }
  0x92   :  { %v669_v21 = vsub.f32 %v22_v2, %v40_v18  ;;  %54 = vadd.xlane.f32.xlu1 %v49_v19  ;;  %v671_v22 = vsub.f32 %v24_v3, %v42_v20 }
  0x93   :  { %v37_v24 = vpop.xlane.xlu0 %36 }
  0x94   :  { %v43_v25 = vmul.f32 0.0078125, %v37_v24  ;;  %v50_v26 = vmul.f32 %v669_v21, %v669_v21  ;;  %v52_v28 = vmul.f32 %v671_v22, %v671_v22 }
  0x96   :  { %v677_v27 = vsub.f32 %v25_v4, %v43_v25  ;;  %58 = vadd.xlane.f32.xlu1 %v51_v23  ;;  %56 = vadd.xlane.f32.xlu0 %v50_v26 }
  0x98   :  { %v53_v29 = vmul.f32 %v677_v27, %v677_v27 }
  0x9a   :  { %60 = vadd.xlane.f32.xlu0 %v52_v28  ;;  %v62_v30 = vsel %vm34_vm0, %v53_v29, 0.0 }
  0x9b   :  { %63 = vadd.xlane.f32.xlu1 %v62_v30 }
 0x11b   :  { %v55_v53 = vpop.xlane.xlu1 %54 }
 0x11c   :  { %v65_v54 = vmul.f32 0.0078125, %v55_v53 }
 0x11e   :  { %v70_v55 = vadd.f32 1e-12, %v65_v54 }
 0x11f   :  { %v59_v56 = vpop.xlane.xlu1 %58  ;;  %v57_v57 = vpop.xlane.xlu0 %56 }
 0x120   :  { %593 = vrsqrt.f32 %v70_v55  ;;  %v67_v58 = vmul.f32 0.0078125, %v59_v56  ;;  %v66_v59 = vmul.f32 0.0078125, %v57_v57 }
 0x122   :  { %v71_v60 = vadd.f32 1e-12, %v66_v59  ;;  %v72_v61 = vadd.f32 1e-12, %v67_v58 }
 0x123   :  { %v61_v62 = vpop.xlane.xlu0 %60 }
 0x124   :  { %v68_v63 = vmul.f32 0.0078125, %v61_v62  ;;  %v64_v0 = vpop.xlane.xlu1 %63  ;;  %595 = vrsqrt.f32 %v71_v60 }
 0x125   :  { %v69_v1 = vmul.f32 0.0078125, %v64_v0  ;;  %597 = vrsqrt.f32 %v72_v61 }
 0x126   :  { %v73_v2 = vadd.f32 1e-12, %v68_v63 }
 0x127   :  { %v74_v3 = vadd.f32 1e-12, %v69_v1 }
 0x128   :  { %599 = vrsqrt.f32 %v73_v2 }
 0x129   :  { %601 = vrsqrt.f32 %v74_v3 }
 0x12d   :  { %v594_v4 = vpop.eup %593 }
 0x12e   :  { %v80_v5 = vmul.f32 %v594_v4, %v663_v14 }
 0x130   :  { %v92_v10 = vmul.f32 %v473_v6, %v80_v5 }
 0x131   :  { %v596_v8 = vpop.eup %595 }
 0x132   :  { %v81_v9 = vmul.f32 %v596_v8, %v669_v21  ;;  %v598_v11 = vpop.eup %597  ;;  %v104_v18 = vadd.f32 %v474_v12, %v92_v10 }
 0x133   :  { %v82_v14 = vmul.f32 %v598_v11, %v665_v15 }
 0x134   :  { %v93_v16 = vmul.f32 %v473_v6, %v81_v9 }
 0x135   :  { %v600_v13 = vpop.eup %599  ;;  %v94_v21 = vmul.f32 %v473_v6, %v82_v14 }
 0x136   :  { %v83_v17 = vmul.f32 %v600_v13, %v671_v22  ;;  %v105_v19 = vadd.f32 %v474_v12, %v93_v16  ;;  %v602_v24 = vpop.eup %601 }
 0x137   :  { %v84_v26 = vmul.f32 %v602_v24, %v677_v27  ;;  %v106_v28 = vadd.f32 %v474_v12, %v94_v21  ;;  %v144_v27 = vld [vmem:[%s810_s2] sm:$0x7] }
 0x138   :  { %v109_v20 = vpack.c.bf16 %v105_v19, %v104_v18  ;;  %v95_v23 = vmul.f32 %v473_v6, %v83_v17  ;;  %v157_v36 = vrot.slane %v144_v27, %v156_v33  ;;  %v149_v37 = vrot.slane %v144_v27, %v148_v34 }
 0x139   :  { %v96_v29 = vmul.f32 %v473_v6, %v84_v26  ;;  %v153_v38 = vrot.slane %v144_v27, %v152_v35 }
 0x13a   :  { %322 = vmatmul.mubr.bf16.vlgmr.msra.gmra.mxu0 %v109_v20  ;;  %547 = vmatmul.mubr.bf16.vlgmr.msra.gmra.mxu1 %v109_v20  ;;  %v107_v25 = vadd.f32 %v474_v12, %v95_v23 }
 0x13b   :  { %331 = vmatprep.mubr.bf16.mxu0 %v604_v47  ;;  %550 = vmatprep.mubr.msk.bf16.mxu1 %vm605_vm1, %v603_v7  ;;  %v108_v15 = vadd.f32 %v474_v12, %v96_v29 }
 0x13c   :  { %v110_v22 = vpack.c.bf16 %v107_v25, %v106_v28 }
 0x13d   :  { %v111_v30 = vpack.c.bf16 %v108_v15, %v108_v15 }
 0x142   :  { %332 = vmatmul.mubr.bf16.gmra.mxu0 %v110_v22  ;;  %551 = vmatmul.mubr.bf16.gmra.mxu1 %v110_v22 }
 0x143   :  { %341 = vmatprep.mubr.bf16.mxu0 %v604_v47  ;;  %554 = vmatprep.mubr.msk.bf16.mxu1 %vm605_vm1, %v603_v7 }
 0x14a   :  { %342 = vmatmul.mubr.bf16.gmra.mxu0 %v111_v30  ;;  %555 = vmatmul.mubr.bf16.gmra.mxu1 %v111_v30 }
 0x1fa   :  { %v323_v39 = vpop.f32.mrf.mxu0  ;;  %v384_v40 = vpop.f32.mrf.mxu1 }
 0x1fb   :  { %v385_v41 = vadd.f32 %v384_v40, %v157_v36  ;;  %v324_v43 = vadd.f32 %v323_v39, %v149_v37 }
 0x1fc   :  { %v325_v7 = vpop.f32.mrf.mxu0  ;;  %v548_v42 = vpop.f32.mrf.mxu1 }
 0x1fd   :  { %v510_v44 = vpack.c.bf16 %v385_v41, %v385_v41  ;;  %v326_v45 = vadd.f32 %v325_v7, %v153_v38 }
 0x1fe   :  { %v327_v46 = vpop.f32.mrf.mxu0  ;;  %v387_v47 = vpop.f32.mrf.mxu1 }
 0x1ff   :  { %460 = vst [vmem:[%s811_s5 + $0x8] sm:$0xf] %v510_v44  ;;  %v509_v48 = vpack.c.bf16 %v326_v45, %v324_v43  ;;  %v388_v49 = vadd.f32 %v387_v47, %v157_v36  ;;  %v328_v52 = vadd.f32 %v327_v46, %v149_v37 }
 0x200   :  { %v329_v50 = vpop.f32.mrf.mxu0  ;;  %v549_v51 = vpop.f32.mrf.mxu1 }
 0x201   :  { %459 = vst [vmem:[%s811_s5] sm:$0xff] %v509_v48  ;;  %v512_v53 = vpack.c.bf16 %v388_v49, %v388_v49  ;;  %v330_v54 = vadd.f32 %v329_v50, %v153_v38 }
 0x202   :  { %v333_v55 = vpop.f32.mrf.mxu0  ;;  %v392_v56 = vpop.f32.mrf.mxu1 }
 0x203   :  { %462 = vst [vmem:[%s811_s5 + $0x14] sm:$0xf] %v512_v53  ;;  %v511_v57 = vpack.c.bf16 %v330_v54, %v328_v52  ;;  %v393_v58 = vadd.f32 %v392_v56, %v157_v36  ;;  %v334_v61 = vadd.f32 %v333_v55, %v149_v37 }
 0x204   :  { %v335_v59 = vpop.f32.mrf.mxu0  ;;  %v552_v60 = vpop.f32.mrf.mxu1 }
 0x205   :  { %461 = vst [vmem:[%s811_s5 + $0xc] sm:$0xff] %v511_v57  ;;  %v514_v62 = vpack.c.bf16 %v393_v58, %v393_v58  ;;  %v336_v63 = vadd.f32 %v335_v59, %v153_v38 }
 0x206   :  { %v337_v0 = vpop.f32.mrf.mxu0  ;;  %v395_v1 = vpop.f32.mrf.mxu1 }
 0x207   :  { %464 = vst [vmem:[%s811_s5 + $0x20] sm:$0xf] %v514_v62  ;;  %v513_v2 = vpack.c.bf16 %v336_v63, %v334_v61  ;;  %v396_v3 = vadd.f32 %v395_v1, %v157_v36  ;;  %v338_v6 = vadd.f32 %v337_v0, %v149_v37 }
 0x208   :  { %v339_v4 = vpop.f32.mrf.mxu0  ;;  %v553_v5 = vpop.f32.mrf.mxu1 }
 0x209   :  { %463 = vst [vmem:[%s811_s5 + $0x18] sm:$0xff] %v513_v2  ;;  %v516_v8 = vpack.c.bf16 %v396_v3, %v396_v3  ;;  %v340_v9 = vadd.f32 %v339_v4, %v153_v38 }
 0x20a   :  { %v343_v10 = vpop.f32.mrf.mxu0  ;;  %v400_v11 = vpop.f32.mrf.mxu1 }
 0x20b   :  { %466 = vst [vmem:[%s811_s5 + $0x2c] sm:$0xf] %v516_v8  ;;  %v515_v12 = vpack.c.bf16 %v340_v9, %v338_v6  ;;  %v401_v13 = vadd.f32 %v400_v11, %v157_v36  ;;  %v344_v18 = vadd.f32 %v343_v10, %v149_v37 }
 0x20c   :  { %v345_v16 = vpop.f32.mrf.mxu0  ;;  %v556_v17 = vpop.f32.mrf.mxu1 }
 0x20d   :  { %465 = vst [vmem:[%s811_s5 + $0x24] sm:$0xff] %v515_v12  ;;  %v518_v19 = vpack.c.bf16 %v401_v13, %v401_v13  ;;  %v346_v14 = vadd.f32 %v345_v16, %v153_v38 }
 0x20e   :  { %v347_v20 = vpop.f32.mrf.mxu0  ;;  %v403_v23 = vpop.f32.mrf.mxu1 }
 0x20f   :  { %468 = vst [vmem:[%s811_s5 + $0x38] sm:$0x1] %v518_v19  ;;  %v517_v24 = vpack.c.bf16 %v346_v14, %v344_v18 }
 0x210   :  { %v348_v21 = vpop.f32.mrf.mxu0  ;;  %v557_v25 = vpop.f32.mrf.mxu1 }
 0x211   :  { %467 = vst [vmem:[%s811_s5 + $0x30] sm:$0x11] %v517_v24 }

// kernel: vit_backbone_forward.14
= control target key start
LH: loop header
LB: loop body
LE: loop exit
PB: predicated region body
PF: predicated region fallthrough
CT: control target
= control target key end

     0   :  { %s1657_s12 = smov 0   ;;  %s1659_s13 = smov 0   ;;  %s1914_s0 = inlined_call_operand.vmem [shape: bf16[2,17,384], index: 0, kind: input, shape index: {}, may-alias: {0,1,2}]   ;;  %s1915_s1 = inlined_call_operand.vmem [shape: bf16[2,17,384], index: 1, kind: input, shape index: {}, may-alias: {0,1,2}]   ;;  %s1916_s2 = inlined_call_operand.vmem [shape: bf16[2,17,384], index: 2, kind: input, shape index: {}, may-alias: {0,1,2}]   ;;  %s1917_s3 = inlined_call_operand.vmem [shape: bf16[2,17,128], index: 3, kind: output, shape index: {}]  }
   0x1   :  { %s1661_s14 = smov 0   ;;  %s1663_s15 = smov 0  }
   0x2   :  { %s1665_s16 = smov 0  }
   0x3 LB: > { %s25_s17 = sadd.s32 1, %s1627_s15  ;;  %p41_p1 = scmp.ne.s32.totalorder %s1619_s13, %s1615_s12  ;;  %s1631_s16 = sphi %s1665_s16, %s13_s16   ;;  %s1627_s15 = sphi %s1663_s15, %s1922_s15   ;;  %s1623_s14 = sphi %s1661_s14, %s1921_s14   ;;  %s1619_s13 = sphi %s1659_s13, %s1920_s13   ;;  %s1615_s12 = sphi %s1657_s12, %s1919_s12  }
   0x4   : > { %p27_p0 = scmp.ge.s32.totalorder %s25_s17, 2  ;;  %p42_p2 = scmp.eq.s32.totalorder %s1631_s16, 0 }
   0x5   : > { %s34_s20 = sadd.s32 1, %s1619_s13  ;;  %p1325_p5 = scmp.ge.s32.totalorder %s1631_s16, 2 }
   0x6   : > { %s1924_s17 = smov (%p27_p0, %s25_s17), 0  ;;  %p1688_p3 = por %p42_p2, %p41_p1 }
   0x7   : > { %s29_s19 = ssub.s32 %s1627_s15, %s1924_s17  ;;  %155 = sbr.rel (%p1325_p5) target bundleno = 33 (0x21), region = 16 }
   0x8   : > { %p32_p4 = scmp.eq.s32.totalorder %s29_s19, 0 }
   0xa   : > { %s1696_s21 = scalar_select %p32_p4, %s1619_s13, %s34_s20  }
   0xc   : > { %158 = sbr.rel (!%p1688_p3) target bundleno = 19 (0x13), region = 20  ;;  %s160_s22 = sand.u32 (%p1688_p3), 1, %s1619_s13  }
   0xd   : > { %s1490_s23 = smul.u32 (%p1688_p3), 36, %s1627_s15 }
   0xe   : > { %s1489_s24 = smul.u32 (%p1688_p3), 12, %s160_s22 }
   0xf   : > { %s166_s27 = scalar_lea.vmem (%p1688_p3), %s1914_s0, %s1490_s23 }
  0x10   : > { %v183_v0 = vld [vmem:[%s166_s27] sm:$0xf] (%p1688_p3)  ;;  %v185_v1 = vld [vmem:[%s166_s27 + $0xc] sm:$0xf] (%p1688_p3)  ;;  %s162_s28 = scalar_lea.vmem (%p1688_p3), [#allocation2], %s1489_s24 }
  0x11   : > { %184 = vst [vmem:[%s162_s28] sm:$0xf] %v183_v0  ;;  %186 = vst [vmem:[%s162_s28 + $0x4] sm:$0xf] %v185_v1  ;;  %v187_v2 = vld [vmem:[%s166_s27 + $0x18] sm:$0xf] }
  0x12   : > { %188 = vst [vmem:[%s162_s28 + $0x8] sm:$0xf] %v187_v2 }
  0x13 PF: > { %218 = sbr.rel (!%p1688_p3) target bundleno = 26 (0x1a), region = 61  ;;  %s220_s29 = sand.u32 (%p1688_p3), 1, %s1619_s13  }
  0x14   : > { %s1327_s30 = smul.u32 (%p1688_p3), 36, %s1627_s15 }
  0x15   : > { %s1491_s4 = smul.u32 (%p1688_p3), 12, %s220_s29 }
  0x16   : > { %s1233_s7 = scalar_lea.vmem (%p1688_p3), %s1915_s1, %s1327_s30 }
  0x17   : > { %v1328_v3 = vld [vmem:[%s1233_s7 + $0x4] sm:$0xf] (%p1688_p3)  ;;  %v1329_v4 = vld [vmem:[%s1233_s7 + $0x10] sm:$0xf] (%p1688_p3)  ;;  %s222_s8 = scalar_lea.vmem (%p1688_p3), [#allocation3], %s1491_s4 }
  0x18   : > { %245 = vst [vmem:[%s222_s8] sm:$0xf] %v1328_v3  ;;  %247 = vst [vmem:[%s222_s8 + $0x4] sm:$0xf] %v1329_v4  ;;  %v1330_v5 = vld [vmem:[%s1233_s7 + $0x1c] sm:$0xf] }
  0x19   : > { %249 = vst [vmem:[%s222_s8 + $0x8] sm:$0xf] %v1330_v5 }
  0x1a PF: > { %279 = sbr.rel (!%p1688_p3) target bundleno = 33 (0x21), region = 102  ;;  %s281_s9 = sand.u32 (%p1688_p3), 1, %s1619_s13  }
  0x1b   : > { %s1331_s10 = smul.u32 (%p1688_p3), 36, %s1627_s15 }
  0x1c   : > { %s1492_s11 = smul.u32 (%p1688_p3), 12, %s281_s9 }
  0x1d   : > { %s1240_s22 = scalar_lea.vmem (%p1688_p3), %s1916_s2, %s1331_s10 }
  0x1e   : > { %v1332_v6 = vld [vmem:[%s1240_s22 + $0x8] sm:$0xf] (%p1688_p3)  ;;  %v1333_v7 = vld [vmem:[%s1240_s22 + $0x14] sm:$0xf] (%p1688_p3)  ;;  %s283_s23 = scalar_lea.vmem (%p1688_p3), [#allocation4], %s1492_s11 }
  0x1f   : > { %306 = vst [vmem:[%s283_s23] sm:$0xf] %v1332_v6  ;;  %308 = vst [vmem:[%s283_s23 + $0x4] sm:$0xf] %v1333_v7  ;;  %v1334_v8 = vld [vmem:[%s1240_s22 + $0x20] sm:$0xf] }
  0x20   : > { %310 = vst [vmem:[%s283_s23 + $0x8] sm:$0xf] %v1334_v8 }
  0x21 PF: > { %p1335_p6 = scmp.ge.s32.totalorder %s1631_s16, 1  ;;  %p339_p7 = scmp.lt.s32.totalorder %s1631_s16, 3 }
  0x23   : > { %p340_p8 = pnand %p1335_p6, %p339_p7 }
  0x24   : > { %s346_s18 = sand.u32 (!%p340_p8), 1, %s1615_s12   ;;  %s1634_s27 = smov (!%p340_p8), 96  }
  0x25   : > { %343 = sbr.rel (%p340_p8) target bundleno = 2484 (0x9b4), region = 143  ;;  %p396_p9 = scmp.lt.s32.totalorder (!%p340_p8), %s1623_s14, 1 }
  0x26   : > { %s1723_s24 = smul.u32 (!%p340_p8), 12, %s346_s18  ;;  %s1636_s5 = smov (!%p340_p8), 32  }
  0x28   : > { %s355_s25 = scalar_lea.vmem (!%p340_p8), [#allocation3], %s1723_s24  ;;  %s348_s26 = scalar_lea.vmem (!%p340_p8), [#allocation2], %s1723_s24 }
  0x29   : > { %s362_s12 = scalar_lea.vmem (!%p340_p8), [#allocation4], %s1723_s24 }
  0x2a   : > { %vm430_vm0 = vcmask 261120   ;;  %v1726_v9 = vld [vmem:[%s355_s25 + $0x8] ss:$0 sps:$4 sm:$0x11]   ;;  %v1728_v10 = vld [vmem:[%s355_s25] sm:$0xff]   ;;  %vm498_vm1 = vcmask 131072  }
  0x2b   : > { %1481 = vmatprep.subr.msk.bf16.mxu0 %vm430_vm0, %v1726_v9  ;;  %v441_v11 = vsel %vm430_vm0, %v1726_v9, 0  ;;  %v1735_v12 = vld [vmem:[%s348_s26] sm:$0xff]   ;;  %v438_v13 = vsel %vm430_vm0, %v1728_v10, 0  ;;  %v1743_v14 = vld [vmem:[%s348_s26 + $0x8] ss:$0 sps:$4 sm:$0x11]  }
  0x2c   : > { %1418 = vmatpush3.bf16.xpose.msra.mxu0 %v441_v11  ;;  %1421 = vmatprep.mubr.msk.bf16.mxu0 %vm430_vm0, %v1735_v12  ;;  %vm491_vm2 = vcmask 138240   ;;  %vm543_vm3 = vcmask 1040384   ;;  %v1754_v37 = vld [vmem:[%s362_s12 + $0x8] ss:$0 sps:$4 sm:$0x11]   ;;  %v1633_v38 = vmov 0  }
  0x2d   : > { %1482 = vmatprep.subr.msk.bf16.mxu0 %vm430_vm0, %v1728_v10  ;;  %v1756_v39 = vsel %vm543_vm3, 65535, %v1633_v38  ;;  %v1760_v41 = vld [vmem:[%s362_s12] sm:$0xff]   ;;  %s1926_s14 = smov (!%p396_p9, %s1623_s14), 1  ;;  %vm613_vm4 = vcmask 253952   ;;  %vm614_vm5 = vsmask.f32 256 }
  0x2e   : > { %v547_v40 = vand.u32 %v1754_v37, %v1756_v39  ;;  %s1494_s28 = smul.u32 12, %s1926_s14  ;;  %vm615_vm6 = vmand %vm613_vm4, %vm614_vm5  ;;  %vm610_vm7 = vcmask 257024   ;;  %s1635_s14 = smov 64   ;;  %vm806_vm8 = vcmask 516352   ;;  %vm803_vm10 = vcmask 519424  }
  0x2f   : > { %vm807_vm9 = vmand %vm806_vm8, %vm614_vm5  ;;  %vm995_vm11 = vcmask 781824   ;;  %vm998_vm12 = vcmask 778752   ;;  %vm1190_vm14 = vcmask 1041152  }
  0x30   : > { %1425 = vmatprep.subr.bf16.mxu1 %v547_v40  ;;  %s1785_s4 = scalar_lea.vmem %s1917_s3, %s1494_s28  ;;  %vm999_vm13 = vmand %vm998_vm12, %vm614_vm5 }
  0x31   : > { %1426 = vmatpush3.bf16.msra.mxu1 %v547_v40  ;;  %v616_v60 = vld [vmem:[%s1785_s4 + $0x8] sm:$0x1]  ;;  %vm1191_vm15 = vmand %vm1190_vm14, %vm614_vm5 }
  0x32   : > { %1427 = vmatprep.subr.bf16.mxu1 %v1760_v41 }
  0x34   : > { %1420 = vmatpush3.bf16.xpose.msra.mxu0 %v438_v13 }
  0x35   : > { %1428 = vmatpush3.bf16.msra.mxu1 %v1760_v41 }
  0x3b   : > { %1422 = vmatmul.mubr.msk.bf16.vlgmr.msra.gmra.mxu0 %vm430_vm0, %v1743_v14 }
  0xfb   : > { %v1423_v15 = vpop.f32.mrf.mxu0 }
  0xfc   : > { %v499_v16 = vsel %vm498_vm1, %v1423_v15, -inf }
  0xfd   : > { %500 = vmax.xlane.f32.xlu1 %v499_v16  ;;  %v477_v17 = vpop.f32.mrf.mxu0 }
  0xfe   : > { %v492_v18 = vsel %vm491_vm2, %v477_v17, -inf }
  0xff   : > { %493 = vmax.xlane.f32.xlu0 %v492_v18  ;;  %v1424_v19 = vpop.f32.mrf.mxu0 }
 0x101   : > { %v480_v20 = vpop.f32.mrf.mxu0 }
 0x102   : > { %v495_v21 = vsel %vm491_vm2, %v480_v20, -inf }
 0x103   : > { %496 = vmax.xlane.f32.xlu0 %v495_v21 }
 0x186   : > { %v501_v22 = vpop.xlane.xlu1 %500 }
 0x187   : > { %v504_v23 = vsub.f32 %v1423_v15, %v501_v22 }
 0x188   : > { %v494_v24 = vpop.xlane.xlu0 %493 }
 0x189   : > { %v502_v25 = vsub.f32 %v477_v17, %v494_v24  ;;  %v509_v26 = vmul.f32 1.442695, %v504_v23 }
 0x18b   : > { %v505_v27 = vmul.f32 1.442695, %v502_v25 }
 0x18c   : > { %v497_v28 = vpop.xlane.xlu0 %496 }
 0x18d   : > { %1545 = vpow2.f32 %v505_v27  ;;  %v503_v29 = vsub.f32 %v480_v20, %v497_v28 }
 0x18e   : > { %1547 = vpow2.f32 %v509_v26 }
 0x18f   : > { %v507_v30 = vmul.f32 1.442695, %v503_v29 }
 0x191   : > { %1549 = vpow2.f32 %v507_v30 }
 0x19a   : > { %v1546_v31 = vpop.eup %1545 }
 0x19b   : > { %v511_v32 = vsel %vm491_vm2, %v1546_v31, 0.0  ;;  %v1548_v33 = vpop.eup %1547 }
 0x19c   : > { %512 = vadd.xlane.f32.xlu1 %v511_v32  ;;  %v517_v35 = vsel %vm498_vm1, %v1548_v33, 0.0 }
 0x19e   : > { %v1550_v34 = vpop.eup %1549 }
 0x19f   : > { %v514_v36 = vsel %vm491_vm2, %v1550_v34, 0.0 }
 0x1a0   : > { %518 = vadd.xlane.f32.xlu1 %v517_v35  ;;  %515 = vadd.xlane.f32.xlu0 %v514_v36 }
 0x1b1   : > { %623 = vrot.lane.b32.xlu1 %v1728_v10, %s1634_s27 }
 0x1b5   : > { %619 = vrot.lane.b32.xlu1 %v1735_v12, %s1634_s27 }
 0x1b6   : > { %625 = vrot.lane.b32.xlu0 %v1726_v9, %s1634_s27 }
 0x1b9   : > { %621 = vrot.lane.b32.xlu1 %v1743_v14, %s1634_s27 }
 0x225   : > { %v513_v42 = vpop.xlane.xlu1 %512 }
 0x226   : > { %1551 = vrcp.f32 %v513_v42 }
 0x229   : > { %v519_v43 = vpop.xlane.xlu1 %518  ;;  %v516_v44 = vpop.xlane.xlu0 %515 }
 0x22a   : > { %1553 = vrcp.f32 %v519_v43 }
 0x22b   : > { %1555 = vrcp.f32 %v516_v44 }
 0x22d   : > { %v626_v45 = vpop.permute.xlu0 %625  ;;  %v624_v47 = vpop.permute.xlu1 %623 }
 0x22e   : > { %1483 = vmatprep.subr.msk.bf16.mxu1 %vm430_vm0, %v626_v45  ;;  %v637_v55 = vsel %vm430_vm0, %v626_v45, 0  ;;  %v634_v57 = vsel %vm430_vm0, %v624_v47, 0 }
 0x231   : > { %v620_v56 = vpop.permute.xlu1 %619 }
 0x233   : > { %v1552_v46 = vpop.eup %1551 }
 0x234   : > { %v523_v51 = vmul.f32 %v1552_v46, %v1546_v31 }
 0x235   : > { %v622_v58 = vpop.permute.xlu1 %621 }
 0x237   : > { %v1554_v48 = vpop.eup %1553 }
 0x238   : > { %v1556_v49 = vpop.eup %1555  ;;  %v525_v50 = vmul.f32 %v1554_v48, %v1548_v33 }
 0x239   : > { %v524_v52 = vmul.f32 %v1556_v49, %v1550_v34 }
 0x23a   : > { %v527_v53 = vpack.c.bf16 %v525_v50, %v525_v50 }
 0x23b   : > { %v526_v54 = vpack.c.bf16 %v524_v52, %v523_v51 }
 0x23d   : > { %1429 = vmatprep.mubr.msk.bf16.mxu1 %vm491_vm2, %v526_v54 }
 0x23e   : > { %1430 = vmatmul.mubr.msk.bf16.vlgmr.msra.gmra.mxu1 %vm491_vm2, %v527_v53 }
 0x23f   : > { %1434 = vmatpush3.bf16.xpose.msra.mxu1 %v637_v55  ;;  %1437 = vmatprep.mubr.msk.bf16.mxu1 %vm430_vm0, %v620_v56 }
 0x240   : > { %1484 = vmatprep.subr.msk.bf16.mxu1 %vm430_vm0, %v624_v47 }
 0x247   : > { %1436 = vmatpush3.bf16.xpose.msra.mxu1 %v634_v57 }
 0x24e   : > { %1438 = vmatmul.mubr.msk.bf16.vlgmr.msra.gmra.mxu1 %vm430_vm0, %v622_v58 }
 0x2fe   : > { %v1431_v59 = vpop.f32.mrf.mxu1 }
 0x2ff   : > { %v1375_v61 = vpack.c.bf16 %v1431_v59, %v1431_v59 }
 0x300   : > { %v583_v62 = vpop.f32.mrf.mxu1 }
 0x301   : > { %v617_v63 = vsel %vm615_vm6, %v1375_v61, %v616_v60  ;;  %v1373_v0 = vpack.c.bf16 %v583_v62, %v583_v62 }
 0x302   : > { %618 = vst [vmem:[%s1785_s4 + $0x8] sm:$0x1] %v617_v63  ;;  %v1432_v1 = vpop.f32.mrf.mxu1 }
 0x303   : > { %611 = vst.msk [vmem:[%s1785_s4] sm:$0xf] %vm610_vm7, %v1373_v0 }
 0x304   : > { %v586_v2 = vpop.f32.mrf.mxu1 }
 0x305   : > { %v1374_v3 = vpack.c.bf16 %v586_v2, %v586_v2 }
 0x307   : > { %612 = vst.msk [vmem:[%s1785_s4 + $0x4] sm:$0xf] %vm610_vm7, %v1374_v3 }
 0x30e   : > { %v1439_v4 = vpop.f32.mrf.mxu1 }
 0x30f   : > { %v693_v11 = vsel %vm498_vm1, %v1439_v4, -inf }
 0x310   : > { %v673_v5 = vpop.f32.mrf.mxu1 }
 0x311   : > { %v687_v6 = vsel %vm491_vm2, %v673_v5, -inf }
 0x312   : > { %688 = vmax.xlane.f32.xlu0 %v687_v6  ;;  %v1440_v7 = vpop.f32.mrf.mxu1 }
 0x314   : > { %v676_v8 = vpop.f32.mrf.mxu1 }
 0x315   : > { %v690_v13 = vsel %vm491_vm2, %v676_v8, -inf }
 0x316   : > { %694 = vmax.xlane.f32.xlu0 %v693_v11  ;;  %691 = vmax.xlane.f32.xlu1 %v690_v13 }
 0x39b   : > { %v689_v15 = vpop.xlane.xlu0 %688 }
 0x39c   : > { %v696_v16 = vsub.f32 %v673_v5, %v689_v15 }
 0x39e   : > { %v699_v17 = vmul.f32 1.442695, %v696_v16 }
 0x39f   : > { %v695_v18 = vpop.xlane.xlu0 %694  ;;  %v692_v19 = vpop.xlane.xlu1 %691 }
 0x3a0   : > { %1557 = vpow2.f32 %v699_v17  ;;  %v698_v20 = vsub.f32 %v1439_v4, %v695_v18  ;;  %v697_v21 = vsub.f32 %v676_v8, %v692_v19 }
 0x3a2   : > { %v703_v22 = vmul.f32 1.442695, %v698_v20  ;;  %v701_v23 = vmul.f32 1.442695, %v697_v21 }
 0x3a4   : > { %1559 = vpow2.f32 %v703_v22 }
 0x3a5   : > { %1561 = vpow2.f32 %v701_v23 }
 0x3ad   : > { %v1558_v24 = vpop.eup %1557 }
 0x3ae   : > { %v705_v25 = vsel %vm491_vm2, %v1558_v24, 0.0 }
 0x3af   : > { %706 = vadd.xlane.f32.xlu0 %v705_v25 }
 0x3b1   : > { %v1560_v26 = vpop.eup %1559 }
 0x3b2   : > { %v1562_v27 = vpop.eup %1561  ;;  %v711_v28 = vsel %vm498_vm1, %v1560_v26, 0.0 }
 0x3b3   : > { %712 = vadd.xlane.f32.xlu1 %v711_v28  ;;  %v708_v29 = vsel %vm491_vm2, %v1562_v27, 0.0 }
 0x3b4   : > { %709 = vadd.xlane.f32.xlu0 %v708_v29 }
 0x3c4   : > { %722 = vrot.lane.b32.xlu1 %v1760_v41, %s1634_s27 }
 0x3c8   : > { %817 = vrot.lane.b32.xlu1 %v1726_v9, %s1635_s14 }
 0x3ca   : > { %724 = vrot.lane.b32.xlu0 %v1754_v37, %s1634_s27 }
 0x3cc   : > { %815 = vrot.lane.b32.xlu1 %v1728_v10, %s1635_s14 }
 0x3ce   : > { %811 = vrot.lane.b32.xlu0 %v1735_v12, %s1635_s14 }
 0x3d0   : > { %813 = vrot.lane.b32.xlu1 %v1743_v14, %s1635_s14 }
 0x438   : > { %v707_v30 = vpop.xlane.xlu0 %706 }
 0x439   : > { %1563 = vrcp.f32 %v707_v30 }
 0x43c   : > { %v713_v31 = vpop.xlane.xlu1 %712 }
 0x43d   : > { %v710_v32 = vpop.xlane.xlu0 %709  ;;  %1565 = vrcp.f32 %v713_v31 }
 0x43e   : > { %1567 = vrcp.f32 %v710_v32 }
 0x440   : > { %v723_v34 = vpop.permute.xlu1 %722 }
 0x441   : > { %v725_v33 = vpop.permute.xlu0 %724 }
 0x442   : > { %v734_v35 = vand.u32 %v725_v33, %v1756_v39 }
 0x444   : > { %1441 = vmatprep.subr.bf16.mxu0 %v734_v35  ;;  %v818_v36 = vpop.permute.xlu1 %817 }
 0x445   : > { %1442 = vmatpush3.bf16.msra.mxu0 %v734_v35  ;;  %v829_v48 = vsel %vm430_vm0, %v818_v36, 0  ;;  %v812_v49 = vpop.permute.xlu0 %811 }
 0x446   : > { %1443 = vmatprep.subr.bf16.mxu0 %v723_v34  ;;  %v1564_v38 = vpop.eup %1563 }
 0x447   : > { %v717_v44 = vmul.f32 %v1564_v38, %v1558_v24 }
 0x448   : > { %v816_v50 = vpop.permute.xlu1 %815 }
 0x449   : > { %1444 = vmatpush3.bf16.msra.mxu0 %v723_v34  ;;  %v826_v51 = vsel %vm430_vm0, %v816_v50, 0 }
 0x44a   : > { %v1566_v40 = vpop.eup %1565  ;;  %1485 = vmatprep.subr.msk.bf16.mxu0 %vm430_vm0, %v818_v36 }
 0x44b   : > { %v1568_v42 = vpop.eup %1567  ;;  %v719_v43 = vmul.f32 %v1566_v40, %v1560_v26 }
 0x44c   : > { %v718_v45 = vmul.f32 %v1568_v42, %v1562_v27  ;;  %v814_v52 = vpop.permute.xlu1 %813 }
 0x44d   : > { %v721_v46 = vpack.c.bf16 %v719_v43, %v719_v43 }
 0x44e   : > { %v720_v47 = vpack.c.bf16 %v718_v45, %v717_v44 }
 0x450   : > { %1445 = vmatprep.mubr.msk.bf16.mxu0 %vm491_vm2, %v720_v47 }
 0x451   : > { %1446 = vmatmul.mubr.msk.bf16.vlgmr.msra.gmra.mxu0 %vm491_vm2, %v721_v46 }
 0x452   : > { %1450 = vmatpush3.bf16.xpose.msra.mxu0 %v829_v48  ;;  %1453 = vmatprep.mubr.msk.bf16.mxu0 %vm430_vm0, %v812_v49 }
 0x453   : > { %1486 = vmatprep.subr.msk.bf16.mxu0 %vm430_vm0, %v816_v50 }
 0x45a   : > { %1452 = vmatpush3.bf16.xpose.msra.mxu0 %v826_v51 }
 0x461   : > { %1454 = vmatmul.mubr.msk.bf16.vlgmr.msra.gmra.mxu0 %vm430_vm0, %v814_v52 }
 0x511   : > { %v1819_v53 = vpop.f32.mrf.mxu0 }
 0x513   : > { %v1821_v54 = vpop.f32.mrf.mxu0 }
 0x515   : > { %v1448_v55 = vpop.f32.mrf.mxu0 }
 0x517   : > { %v1823_v56 = vpop.f32.mrf.mxu0 }
 0x521   : > { %v1455_v57 = vpop.f32.mrf.mxu0 }
 0x522   : > { %v885_v62 = vsel %vm498_vm1, %v1455_v57, -inf }
 0x523   : > { %v865_v58 = vpop.f32.mrf.mxu0 }
 0x524   : > { %v879_v59 = vsel %vm491_vm2, %v865_v58, -inf }
 0x525   : > { %880 = vmax.xlane.f32.xlu0 %v879_v59  ;;  %v1456_v60 = vpop.f32.mrf.mxu0 }
 0x527   : > { %v868_v61 = vpop.f32.mrf.mxu0 }
 0x528   : > { %v882_v63 = vsel %vm491_vm2, %v868_v61, -inf }
 0x529   : > { %886 = vmax.xlane.f32.xlu0 %v885_v62  ;;  %883 = vmax.xlane.f32.xlu1 %v882_v63 }
 0x5ae   : > { %v881_v0 = vpop.xlane.xlu0 %880 }
 0x5af   : > { %v888_v1 = vsub.f32 %v865_v58, %v881_v0 }
 0x5b1   : > { %v891_v2 = vmul.f32 1.442695, %v888_v1 }
 0x5b2   : > { %v887_v3 = vpop.xlane.xlu0 %886  ;;  %v884_v4 = vpop.xlane.xlu1 %883 }
 0x5b3   : > { %1569 = vpow2.f32 %v891_v2  ;;  %v890_v5 = vsub.f32 %v1455_v57, %v887_v3  ;;  %v889_v6 = vsub.f32 %v868_v61, %v884_v4  ;;  %v1378_v3 = vpack.c.bf16 %v1819_v53, %v1819_v53 }
 0x5b5   : > { %v895_v7 = vmul.f32 1.442695, %v890_v5  ;;  %v893_v8 = vmul.f32 1.442695, %v889_v6  ;;  %v1376_v5 = vpack.c.bf16 %v1821_v54, %v1821_v54  ;;  %v1377_v6 = vpack.c.bf16 %v1823_v56, %v1823_v56 }
 0x5b7   : > { %1571 = vpow2.f32 %v895_v7 }
 0x5b8   : > { %1573 = vpow2.f32 %v893_v8 }
 0x5c0   : > { %v1570_v11 = vpop.eup %1569 }
 0x5c1   : > { %v897_v13 = vsel %vm491_vm2, %v1570_v11, 0.0 }
 0x5c2   : > { %898 = vadd.xlane.f32.xlu0 %v897_v13  ;;  %v808_v13 = vld [vmem:[%s1785_s4 + $0x8] sm:$0x1] }
 0x5c4   : > { %v1572_v15 = vpop.eup %1571 }
 0x5c5   : > { %v1574_v16 = vpop.eup %1573  ;;  %v903_v17 = vsel %vm498_vm1, %v1572_v15, 0.0 }
 0x5c6   : > { %904 = vadd.xlane.f32.xlu1 %v903_v17  ;;  %v900_v18 = vsel %vm491_vm2, %v1574_v16, 0.0 }
 0x5c7   : > { %901 = vadd.xlane.f32.xlu0 %v900_v18 }
 0x5d7   : > { %914 = vrot.lane.b32.xlu1 %v1760_v41, %s1635_s14 }
 0x5db   : > { %1009 = vrot.lane.b32.xlu1 %v1726_v9, %s1636_s5 }
 0x5dd   : > { %916 = vrot.lane.b32.xlu0 %v1754_v37, %s1635_s14 }
 0x5df   : > { %1007 = vrot.lane.b32.xlu1 %v1728_v10, %s1636_s5 }
 0x5e1   : > { %1003 = vrot.lane.b32.xlu0 %v1735_v12, %s1636_s5 }
 0x5e3   : > { %1005 = vrot.lane.b32.xlu1 %v1743_v14, %s1636_s5 }
 0x64b   : > { %v899_v19 = vpop.xlane.xlu0 %898 }
 0x64c   : > { %1575 = vrcp.f32 %v899_v19 }
 0x64f   : > { %v905_v20 = vpop.xlane.xlu1 %904 }
 0x650   : > { %v902_v21 = vpop.xlane.xlu0 %901  ;;  %1577 = vrcp.f32 %v905_v20 }
 0x651   : > { %1579 = vrcp.f32 %v902_v21 }
 0x653   : > { %v915_v9 = vpop.permute.xlu1 %914 }
 0x654   : > { %v917_v22 = vpop.permute.xlu0 %916 }
 0x655   : > { %v926_v23 = vand.u32 %v917_v22, %v1756_v39 }
 0x657   : > { %1457 = vmatprep.subr.bf16.mxu1 %v926_v23  ;;  %v1010_v10 = vpop.permute.xlu1 %1009 }
 0x658   : > { %1458 = vmatpush3.bf16.msra.mxu1 %v926_v23  ;;  %v1021_v30 = vsel %vm430_vm0, %v1010_v10, 0  ;;  %v1004_v31 = vpop.permute.xlu0 %1003 }
 0x659   : > { %1459 = vmatprep.subr.bf16.mxu1 %v915_v9  ;;  %v1576_v24 = vpop.eup %1575 }
 0x65a   : > { %v909_v26 = vmul.f32 %v1576_v24, %v1570_v11 }
 0x65b   : > { %v1008_v32 = vpop.permute.xlu1 %1007 }
 0x65c   : > { %1460 = vmatpush3.bf16.msra.mxu1 %v915_v9  ;;  %v1018_v33 = vsel %vm430_vm0, %v1008_v32, 0 }
 0x65d   : > { %v1578_v12 = vpop.eup %1577  ;;  %1487 = vmatprep.subr.msk.bf16.mxu1 %vm430_vm0, %v1010_v10 }
 0x65e   : > { %v1580_v14 = vpop.eup %1579  ;;  %v911_v25 = vmul.f32 %v1578_v12, %v1572_v15 }
 0x65f   : > { %v910_v27 = vmul.f32 %v1580_v14, %v1574_v16  ;;  %v1006_v34 = vpop.permute.xlu1 %1005 }
 0x660   : > { %v913_v28 = vpack.c.bf16 %v911_v25, %v911_v25 }
 0x661   : > { %v912_v29 = vpack.c.bf16 %v910_v27, %v909_v26 }
 0x663   : > { %1461 = vmatprep.mubr.msk.bf16.mxu1 %vm491_vm2, %v912_v29 }
 0x664   : > { %1462 = vmatmul.mubr.msk.bf16.vlgmr.msra.gmra.mxu1 %vm491_vm2, %v913_v28 }
 0x665   : > { %1466 = vmatpush3.bf16.xpose.msra.mxu1 %v1021_v30  ;;  %1469 = vmatprep.mubr.msk.bf16.mxu1 %vm430_vm0, %v1004_v31 }
 0x666   : > { %1488 = vmatprep.subr.msk.bf16.mxu1 %vm430_vm0, %v1008_v32 }
 0x66d   : > { %1468 = vmatpush3.bf16.xpose.msra.mxu1 %v1018_v33 }
 0x674   : > { %1470 = vmatmul.mubr.msk.bf16.vlgmr.msra.gmra.mxu1 %vm430_vm0, %v1006_v34  ;;  %vm1187_vm0 = vcmask 1044224  }
 0x724   : > { %v1463_v35 = vpop.f32.mrf.mxu1 }
 0x725   : > { %v1381_v4 = vpack.c.bf16 %v1463_v35, %v1463_v35 }
 0x726   : > { %v962_v36 = vpop.f32.mrf.mxu1 }
 0x728   : > { %v1464_v38 = vpop.f32.mrf.mxu1 }
 0x72a   : > { %v965_v40 = vpop.f32.mrf.mxu1 }
 0x72b   : > { %v1380_v53 = vpack.c.bf16 %v965_v40, %v965_v40 }
 0x734   : > { %v1471_v42 = vpop.f32.mrf.mxu1 }
 0x735   : > { %v1077_v47 = vsel %vm498_vm1, %v1471_v42, -inf }
 0x736   : > { %v1057_v43 = vpop.f32.mrf.mxu1 }
 0x737   : > { %v1071_v44 = vsel %vm491_vm2, %v1057_v43, -inf }
 0x738   : > { %1072 = vmax.xlane.f32.xlu0 %v1071_v44  ;;  %v1472_v45 = vpop.f32.mrf.mxu1 }
 0x73a   : > { %v1060_v46 = vpop.f32.mrf.mxu1 }
 0x73b   : > { %v1074_v48 = vsel %vm491_vm2, %v1060_v46, -inf }
 0x73c   : > { %1078 = vmax.xlane.f32.xlu0 %v1077_v47  ;;  %1075 = vmax.xlane.f32.xlu1 %v1074_v48 }
 0x7c1   : > { %v1073_v49 = vpop.xlane.xlu0 %1072 }
 0x7c2   : > { %v1080_v50 = vsub.f32 %v1057_v43, %v1073_v49 }
 0x7c4   : > { %v1083_v51 = vmul.f32 1.442695, %v1080_v50 }
 0x7c5   : > { %v1079_v52 = vpop.xlane.xlu0 %1078  ;;  %v1076_v55 = vpop.xlane.xlu1 %1075 }
 0x7c6   : > { %1581 = vpow2.f32 %v1083_v51  ;;  %v1082_v57 = vsub.f32 %v1471_v42, %v1079_v52  ;;  %v1081_v58 = vsub.f32 %v1060_v46, %v1076_v55 }
 0x7c8   : > { %v1087_v59 = vmul.f32 1.442695, %v1082_v57  ;;  %v1085_v60 = vmul.f32 1.442695, %v1081_v58 }
 0x7ca   : > { %1583 = vpow2.f32 %v1087_v59 }
 0x7cb   : > { %1585 = vpow2.f32 %v1085_v60 }
 0x7d3   : > { %v1582_v61 = vpop.eup %1581 }
 0x7d4   : > { %v1089_v62 = vsel %vm491_vm2, %v1582_v61, 0.0 }
 0x7d5   : > { %1090 = vadd.xlane.f32.xlu0 %v1089_v62 }
 0x7d7   : > { %v1584_v63 = vpop.eup %1583 }
 0x7d8   : > { %v1586_v0 = vpop.eup %1585  ;;  %v1095_v1 = vsel %vm498_vm1, %v1584_v63, 0.0 }
 0x7d9   : > { %1096 = vadd.xlane.f32.xlu1 %v1095_v1  ;;  %v1092_v2 = vsel %vm491_vm2, %v1586_v0, 0.0 }
 0x7da   : > { %1093 = vadd.xlane.f32.xlu0 %v1092_v2 }
 0x7ea   : > { %1106 = vrot.lane.b32.xlu1 %v1760_v41, %s1636_s5  ;;  %v1379_v41 = vpack.c.bf16 %v962_v36, %v962_v36 }
 0x7ee   : > { %798 = vrot.lane.b32.xlu1 %v1378_v3, %s1636_s5 }
 0x7f0   : > { %1108 = vrot.lane.b32.xlu0 %v1754_v37, %s1636_s5 }
 0x7f2   : > { %990 = vrot.lane.b32.xlu1 %v1381_v4, %s1635_s14 }
 0x7f4   : > { %794 = vrot.lane.b32.xlu0 %v1376_v5, %s1636_s5 }
 0x7f6   : > { %796 = vrot.lane.b32.xlu1 %v1377_v6, %s1636_s5 }
 0x7f8   : > { %986 = vrot.lane.b32.xlu0 %v1379_v41, %s1635_s14 }
 0x7fa   : > { %988 = vrot.lane.b32.xlu1 %v1380_v53, %s1635_s14 }
 0x85e   : > { %v1091_v37 = vpop.xlane.xlu0 %1090 }
 0x85f   : > { %1587 = vrcp.f32 %v1091_v37 }
 0x862   : > { %v1097_v7 = vpop.xlane.xlu1 %1096 }
 0x863   : > { %v1094_v54 = vpop.xlane.xlu0 %1093  ;;  %1589 = vrcp.f32 %v1097_v7 }
 0x864   : > { %1591 = vrcp.f32 %v1094_v54 }
 0x866   : > { %v1107_v56 = vpop.permute.xlu1 %1106 }
 0x867   : > { %v1109_v8 = vpop.permute.xlu0 %1108 }
 0x868   : > { %v1118_v11 = vand.u32 %v1109_v8, %v1756_v39 }
 0x86a   : > { %v799_v15 = vpop.permute.xlu1 %798  ;;  %1473 = vmatprep.subr.bf16.mxu0 %v1118_v11 }
 0x86b   : > { %v795_v16 = vpop.permute.xlu0 %794  ;;  %v809_v17 = vsel %vm807_vm9, %v799_v15, %v808_v13  ;;  %1474 = vmatpush3.bf16.msra.mxu0 %v1118_v11 }
 0x86c   : > { %804 = vst.msk [vmem:[%s1785_s4] sm:$0xf] %vm803_vm10, %v795_v16  ;;  %810 = vst [vmem:[%s1785_s4 + $0x8] sm:$0x1] %v809_v17  ;;  %1475 = vmatprep.subr.bf16.mxu0 %v1107_v56  ;;  %v1588_v39 = vpop.eup %1587 }
 0x86d   : > { %v1101_v23 = vmul.f32 %v1588_v39, %v1582_v61 }
 0x86e   : > { %v991_v18 = vpop.permute.xlu1 %990 }
 0x86f   : > { %v987_v19 = vpop.permute.xlu0 %986  ;;  %1476 = vmatpush3.bf16.msra.mxu0 %v1107_v56 }
 0x870   : > { %v1590_v20 = vpop.eup %1589  ;;  %996 = vst.msk [vmem:[%s1785_s4] sm:$0xf] %vm995_vm11, %v987_v19 }
 0x871   : > { %v1592_v21 = vpop.eup %1591  ;;  %v1103_v22 = vmul.f32 %v1590_v20, %v1584_v63 }
 0x872   : > { %v797_v9 = vpop.permute.xlu1 %796  ;;  %v1102_v10 = vmul.f32 %v1592_v21, %v1586_v0 }
 0x873   : > { %v1000_v24 = vld [vmem:[%s1785_s4 + $0x8] sm:$0x1]  ;;  %805 = vst.msk [vmem:[%s1785_s4 + $0x4] sm:$0xf] %vm803_vm10, %v797_v9  ;;  %v1105_v12 = vpack.c.bf16 %v1103_v22, %v1103_v22 }
 0x874   : > { %v1001_v14 = vsel %vm999_vm13, %v991_v18, %v1000_v24  ;;  %v1104_v25 = vpack.c.bf16 %v1102_v10, %v1101_v23 }
 0x875   : > { %1002 = vst [vmem:[%s1785_s4 + $0x8] sm:$0x1] %v1001_v14 }
 0x876   : > { %1477 = vmatprep.mubr.msk.bf16.mxu0 %vm491_vm2, %v1104_v25  ;;  %v989_v26 = vpop.permute.xlu1 %988 }
 0x877   : > { %1478 = vmatmul.mubr.msk.bf16.vlgmr.msra.gmra.mxu0 %vm491_vm2, %v1105_v12  ;;  %997 = vst.msk [vmem:[%s1785_s4 + $0x4] sm:$0xf] %vm995_vm11, %v989_v26 }
 0x87c   : > { %v1192_v35 = vld [vmem:[%s1785_s4 + $0x8] sm:$0x1] }
 0x937   : > { %v1479_v27 = vpop.f32.mrf.mxu0 }
 0x938   : > { %v1384_v28 = vpack.c.bf16 %v1479_v27, %v1479_v27 }
 0x939   : > { %v1154_v29 = vpop.f32.mrf.mxu0 }
 0x93a   : > { %v1382_v30 = vpack.c.bf16 %v1154_v29, %v1154_v29  ;;  %1182 = vrot.lane.b32.xlu0 %v1384_v28, %s1634_s27 }
 0x93b   : > { %v1480_v31 = vpop.f32.mrf.mxu0 }
 0x93c   : > { %1178 = vrot.lane.b32.xlu1 %v1382_v30, %s1634_s27 }
 0x93d   : > { %v1157_v32 = vpop.f32.mrf.mxu0 }
 0x93e   : > { %v1383_v33 = vpack.c.bf16 %v1157_v32, %v1157_v32 }
 0x940   : > { %1180 = vrot.lane.b32.xlu0 %v1383_v33, %s1634_s27 }
 0x9ac   : > { %v1183_v34 = vpop.permute.xlu0 %1182 }
 0x9ad   : > { %v1193_v36 = vsel %vm1191_vm15, %v1183_v34, %v1192_v35 }
 0x9ae   : > { %1194 = vst [vmem:[%s1785_s4 + $0x8] sm:$0x1] %v1193_v36  ;;  %v1179_v38 = vpop.permute.xlu1 %1178 }
 0x9af   : > { %1188 = vst.msk [vmem:[%s1785_s4] sm:$0xf] %vm1187_vm0, %v1179_v38 }
 0x9b2   : > { %v1181_v40 = vpop.permute.xlu0 %1180 }
 0x9b3   : > { %1189 = vst.msk [vmem:[%s1785_s4 + $0x4] sm:$0xf] %vm1187_vm0, %v1181_v40 }
 0x9b4 PF: > { %s13_s16 = sadd.s32 1, %s1631_s16   ;;  %s1919_s12 = smov %s1619_s13 }
 0x9b5   : > { %p10_p10 = scmp.ge.s32.totalorder %s13_s16, 4   ;;  %s1920_s13 = smov %s1696_s21 }
 0x9b6   : > { %s1921_s14 = smov %s1627_s15  ;;  %s1922_s15 = smov %s1924_s17 }
 0x9b7   :  { %12 = sbr.rel (!%p10_p10) target bundleno = 3 (0x3), region = 206 }

// kernel: vit_backbone_forward.23
= control target key start
LH: loop header
LB: loop body
LE: loop exit
PB: predicated region body
PF: predicated region fallthrough
CT: control target
= control target key end

     0   :  { %6 = vsyncpa [#allocation3], 0  ;;  %s406_s0 = inlined_call_operand.vmem [shape: f32[2,17,128], index: 0, kind: input, shape index: {}]   ;;  %s407_s1 = inlined_call_operand.hbm [shape: f32[2,1,128], index: 1, kind: output, shape index: {}]  }
   0x1   :  { %8 = vsyncpa [#allocation3 + $0x1], 0  ;;  %s319_s6 = smov 0   ;;  %s321_s7 = smov 0  }
   0x2   :  { %s323_s8 = smov 0   ;;  %s325_s9 = smov 0  }
   0x3 LB: > { %s340_s10 = sadd.s32 4294967295, %s306_s9   ;;  %s198_s11 = sadd.s32 4294967294, %s306_s9   ;;  %s306_s9 = sphi %s325_s9, %s413_s9   ;;  %s302_s8 = sphi %s323_s8, %s412_s8   ;;  %s298_s7 = sphi %s321_s7, %s411_s7   ;;  %s294_s6 = sphi %s319_s6, %s410_s6  }
   0x4   : > { %s344_s12 = sadd.s32 1, %s306_s9   ;;  %s47_s13 = sadd.s32 1, %s302_s8 }
   0x5   : > { %s44_s14 = ssub.s32 %s306_s9, %s344_s12  ;;  %p57_p0 = scmp.ne.s32.totalorder %s302_s8, %s298_s7 }
   0x6   : > { %p45_p1 = scmp.eq.s32.totalorder %s44_s14, 0  ;;  %p58_p2 = scmp.eq.s32.totalorder %s340_s10, 1 }
   0x7   : > { %p63_p3 = scmp.ne.s32.totalorder %s298_s7, %s294_s6  ;;  %p64_p4 = scmp.eq.s32.totalorder %s198_s11, 1 }
   0x8   : > { %s355_s15 = scalar_select %p45_p1, %s302_s8, %s47_s13  }
   0x9   : > { %p357_p5 = por %p58_p2, %p57_p0  ;;  %p361_p6 = por %p64_p4, %p63_p3 }
   0xa   : > { %p201_p7 = scmp.ge.s32.totalorder %s306_s9, 1  ;;  %p90_p8 = scmp.lt.s32.totalorder %s306_s9, 3 }
   0xc   : > { %p91_p9 = pnand %p201_p7, %p90_p8 }
   0xd   : > { %p109_p10 = scmp.lt.s32.totalorder (!%p91_p9), %s340_s10, 1  ;;  %s107_s23 = sand.u32 (!%p91_p9), 1, %s298_s7  }
   0xe   : > { %94 = sbr.rel (%p91_p9) target bundleno = 56 (0x38), region = 24  ;;  %s108_s24 = scalar_lea.vmem (!%p91_p9), [#allocation2], %s107_s23 }
   0xf   : > { %s143_s25 = sshll.u32 (!%p91_p9), %s108_s24, 4  ;;  %s203_s26 = sshll.u32 (!%p91_p9), %s340_s10, 4  ;;  %s144_s25 = int_to_ptr.vmem [resolvable:$true] %s143_s25 }
  0x10   : > { %s141_s29 = scalar_lea.hbm (!%p91_p9), %s407_s1, %s203_s26  ;;  %s131_s30 = scalar_lea.sflag (!%p91_p9), [#allocation3], %s107_s23 }
  0x11   : > { %s246_s2 = scalar_lea.vmem (!%p91_p9), %s144_s25, 16  ;;  %s308_s3 = smov (!%p91_p9), [#allocation2]  }
  0x12   : > { %p247_p11 = scmp.ne.s32.totalorder (!%p91_p9), %s144_s25, %s246_s2  ;;  %s250_s4 = sshll.u32 (!%p91_p9), %s308_s3, 4  ;;  %s251_s4 = int_to_ptr.vmem [resolvable:$false] %s250_s4 }
  0x13   : > { %s110_s18 = scalar_select %p109_p10, %s340_s10, 1  ;;  %vm118_vm0 = vcmask 1040384  }
  0x14   : > { %p248_p12 = pnand %p247_p11, %p357_p5  ;;  %s252_s5 = scalar_lea.vmem %s251_s4, 32 }
  0x15   : > { %s206_s19 = smul.u32 24, %s110_s18  ;;  %p253_p0 = scmp.lt.s32.totalorder %s144_s25, %s251_s4 }
  0x16   : > { %p249_p13 = pneg %p248_p12  ;;  %p254_p1 = scmp.lt.s32.totalorder %s252_s5, %s246_s2 }
  0x17   : > { %s113_s22 = scalar_lea.vmem %s406_s0, %s206_s19 }
  0x18   : > { %v114_v0 = vld [vmem:[%s113_s22] sm:$0xff]  ;;  %v115_v1 = vld [vmem:[%s113_s22 + $0x8] sm:$0xff]  ;;  %v116_v2 = vld [vmem:[%s113_s22 + $0x10] sm:$0x1]  ;;  %p255_p2 = por %p254_p1, %p253_p0 }
  0x19   : > { %v117_v3 = vadd.f32 %v115_v1, %v114_v0  ;;  %v119_v4 = vsel %vm118_vm0, %v116_v2, 0.0 }
  0x1a   : > { %p256_p3 = pnand %p255_p2, %p249_p13 }
  0x1b   : > { %v120_v5 = vadd.f32 %v119_v4, %v117_v3 }
  0x1d   : > { %v121_v6 = vrot.slane %v120_v5, 4 }
  0x1f   : > { %v122_v7 = vadd.f32 %v121_v6, %v120_v5 }
  0x21   : > { %v123_v8 = vrot.slane %v122_v7, 2 }
  0x23   : > { %v124_v9 = vadd.f32 %v123_v8, %v122_v7 }
  0x25   : > { %v125_v10 = vrot.slane %v124_v9, 1 }
  0x27   : > { %v126_v11 = vadd.f32 %v125_v10, %v124_v9 }
  0x29   : > { %v128_v12 = vmul.f32 0.05882353, %v126_v11 }
  0x2b   : > { %129 = vst [vmem:[%s108_s24] sm:$0x1] %v128_v12 }
  0x2c   : > { %259 = shalt.err (!%p256_p3)
}
  0x2d   : > { %s260_s10 = scalar_lea.hbm %s141_s29, 16  ;;  %s264_s14 = scalar_lea.hbm %s407_s1, 32 }
  0x2e   : > { %p261_p4 = scmp.ne.s32.totalorder %s141_s29, %s260_s10  ;;  %p265_p9 = scmp.lt.s32.totalorder %s141_s29, %s407_s1 }
  0x2f   : > { %p266_p10 = scmp.lt.s32.totalorder %s264_s14, %s260_s10 }
  0x30   : > { %p262_p7 = pnand %p261_p4, %p357_p5 }
  0x31   : > { %p267_p11 = por %p266_p10, %p265_p9 }
  0x32   : > { %p263_p8 = pneg %p262_p7 }
  0x34   : > { %p268_p12 = pnand %p267_p11, %p263_p8 }
  0x36   : > { %271 = shalt.err (!%p268_p12)
}
  0x37   : > { %207 = dma.vmem_to_hbm [thread:$0]  (%p357_p5), %s144_s25, 16, %s141_s29, %s131_s30  }
  0x38 PF: > { %p213_p13 = scmp.ge.s32.totalorder %s306_s9, 2  ;;  %s155_s20 = sand.u32 1, %s294_s6  }
  0x39   : > { %s156_s21 = scalar_lea.sflag [#allocation3], %s155_s20 }
  0x3a   : > { %p210_p0 = pnand %p213_p13, %p361_p6 }
  0x3c   : > { %p211_p1 = pneg %p210_p0 }
  0x3e   : > { %289 = dma.done.wait (%p211_p1), %s156_s21, 16  }
  0x3f   : > { %291 = vsyncadd (%p211_p1), %s156_s21, 4294967280  ;;  %p11_p2 = scmp.ge.s32.totalorder %s344_s12, 4   ;;  %s410_s6 = smov %s298_s7 }
  0x40   : > { %s411_s7 = smov %s302_s8  ;;  %s412_s8 = smov %s355_s15 }
  0x41   : > { %s413_s9 = smov %s344_s12  ;;  %13 = sbr.rel (!%p11_p2) target bundleno = 3 (0x3), region = 59 }
  0x46   :  { %160 = vsyncpa [#allocation3], 1 }
  0x47   :  { %162 = vsyncpa [#allocation3 + $0x1], 1 }

// kernel: vit_backbone_forward.16
= control target key start
LH: loop header
LB: loop body
LE: loop exit
PB: predicated region body
PF: predicated region fallthrough
CT: control target
= control target key end

     0   :  { %vm34_vm0 = vcmask 1041408   ;;  %v779_v53 = vmov 0   ;;  %s1101_s0 = inlined_call_operand.vmem [shape: f32[34,128], index: 0, kind: input, shape index: {}]   ;;  %s1102_s1 = inlined_call_operand.vmem [shape: bf16[128,512], index: 1, kind: input, shape index: {}]   ;;  %s1103_s3 = inlined_call_operand.vmem [shape: f32[1,128], index: 3, kind: input, shape index: {}]   ;;  %s1104_s4 = inlined_call_operand.vmem [shape: f32[1,128], index: 4, kind: input, shape index: {}]   ;;  %s1105_s2 = inlined_call_operand.vmem [shape: f32[1,512], index: 2, kind: input, shape index: {}]   ;;  %s1106_s5 = inlined_call_operand.vmem [shape: bf16[34,512], index: 5, kind: output, shape index: {}]  }
   0x1   :  { %v21_v0 = vld [vmem:[%s1101_s0] sm:$0xff]  ;;  %v23_v1 = vld [vmem:[%s1101_s0 + $0x10] sm:$0xff]  ;;  %v22_v2 = vld [vmem:[%s1101_s0 + $0x8] sm:$0xff]  ;;  %358 = vmatprep.mubr.bf16.mxu0 %v779_v53  ;;  %419 = vmatprep.mubr.bf16.mxu1 %v779_v53 }
   0x2   :  { %26 = vadd.xlane.f32.xlu0 %v21_v0  ;;  %30 = vadd.xlane.f32.xlu1 %v23_v1  ;;  %v24_v3 = vld [vmem:[%s1101_s0 + $0x18] sm:$0xff]  ;;  %v25_v4 = vld [vmem:[%s1101_s0 + $0x20] sm:$0x3]  ;;  %v681_v6 = vld [vmem:[%s1102_s1 + $0xe4] ss:$16 sps:$4 sm:$0xff]  }
   0x3   :  { %v35_v5 = vsel %vm34_vm0, %v25_v4, 0.0  ;;  %v683_v7 = vld [vmem:[%s1102_s1 + $0xec] ss:$16 sps:$4 sm:$0xff]   ;;  %326 = vmatprep.subr.bf16.mxu0 %v681_v6  ;;  %v685_v8 = vld [vmem:[%s1102_s1 + $0xe0] ss:$16 sps:$4 sm:$0xff]  }
   0x4   :  { %v686_v9 = vld [vmem:[%s1102_s1 + $0xe8] ss:$16 sps:$4 sm:$0xff]   ;;  %387 = vmatprep.subr.bf16.mxu1 %v683_v7  ;;  %327 = vmatpush1.bf16.msra.mxu0 %v685_v8  ;;  %v687_v31 = vld [vmem:[%s1102_s1 + $0xc4] ss:$16 sps:$4 sm:$0xff]   ;;  %v689_v32 = vld [vmem:[%s1102_s1 + $0xcc] ss:$16 sps:$4 sm:$0xff]  }
   0x5   :  { %388 = vmatpush1.bf16.msra.mxu1 %v686_v9  ;;  %v691_v33 = vld [vmem:[%s1102_s1 + $0xc0] ss:$16 sps:$4 sm:$0xff]   ;;  %v692_v34 = vld [vmem:[%s1102_s1 + $0xc8] ss:$16 sps:$4 sm:$0xff]   ;;  %328 = vmatprep.subr.bf16.mxu0 %v687_v31  ;;  %v693_v35 = vld [vmem:[%s1102_s1 + $0xa4] ss:$16 sps:$4 sm:$0xff]  }
   0x6   :  { %28 = vadd.xlane.f32.xlu0 %v22_v2  ;;  %32 = vadd.xlane.f32.xlu1 %v24_v3  ;;  %v695_v36 = vld [vmem:[%s1102_s1 + $0xac] ss:$16 sps:$4 sm:$0xff]   ;;  %v697_v37 = vld [vmem:[%s1102_s1 + $0xa0] ss:$16 sps:$4 sm:$0xff]   ;;  %v698_v38 = vld [vmem:[%s1102_s1 + $0xa8] ss:$16 sps:$4 sm:$0xff]  }
   0x7   :  { %389 = vmatprep.subr.bf16.mxu1 %v689_v32  ;;  %v699_v39 = vld [vmem:[%s1102_s1 + $0x84] ss:$16 sps:$4 sm:$0xff]   ;;  %v701_v40 = vld [vmem:[%s1102_s1 + $0x8c] ss:$16 sps:$4 sm:$0xff]   ;;  %v703_v41 = vld [vmem:[%s1102_s1 + $0x80] ss:$16 sps:$4 sm:$0xff]  }
   0x8   :  { %329 = vmatpush1.bf16.msra.mxu0 %v691_v33  ;;  %v704_v42 = vld [vmem:[%s1102_s1 + $0x88] ss:$16 sps:$4 sm:$0xff]   ;;  %v705_v43 = vld [vmem:[%s1102_s1 + $0x64] ss:$16 sps:$4 sm:$0xff]   ;;  %v707_v44 = vld [vmem:[%s1102_s1 + $0x6c] ss:$16 sps:$4 sm:$0xff]  }
   0x9   :  { %390 = vmatpush1.bf16.msra.mxu1 %v692_v34  ;;  %330 = vmatprep.subr.bf16.mxu0 %v693_v35  ;;  %v709_v45 = vld [vmem:[%s1102_s1 + $0x60] ss:$16 sps:$4 sm:$0xff]   ;;  %v710_v46 = vld [vmem:[%s1102_s1 + $0x68] ss:$16 sps:$4 sm:$0xff]   ;;  %v711_v47 = vld [vmem:[%s1102_s1 + $0x44] ss:$16 sps:$4 sm:$0xff]  }
   0xa   :  { %36 = vadd.xlane.f32.xlu0 %v35_v5  ;;  %391 = vmatprep.subr.bf16.mxu1 %v695_v36  ;;  %v713_v48 = vld [vmem:[%s1102_s1 + $0x4c] ss:$16 sps:$4 sm:$0xff]   ;;  %v715_v49 = vld [vmem:[%s1102_s1 + $0x40] ss:$16 sps:$4 sm:$0xff]   ;;  %v716_v50 = vld [vmem:[%s1102_s1 + $0x48] ss:$16 sps:$4 sm:$0xff]  }
   0xb   :  { %v717_v51 = vld [vmem:[%s1102_s1 + $0x24] ss:$16 sps:$4 sm:$0xff]   ;;  %v719_v52 = vld [vmem:[%s1102_s1 + $0x2c] ss:$16 sps:$4 sm:$0xff]   ;;  %v721_v54 = vld [vmem:[%s1102_s1 + $0x20] ss:$16 sps:$4 sm:$0xff]  }
   0xc   :  { %331 = vmatpush1.bf16.msra.mxu0 %v697_v37  ;;  %v722_v55 = vld [vmem:[%s1102_s1 + $0x28] ss:$16 sps:$4 sm:$0xff]   ;;  %v723_v56 = vld [vmem:[%s1102_s1 + $0x4] ss:$16 sps:$4 sm:$0xff]   ;;  %v725_v57 = vld [vmem:[%s1102_s1 + $0xc] ss:$16 sps:$4 sm:$0xff]   ;;  %v146_v37 = vlaneseq }
   0xd   :  { %392 = vmatpush1.bf16.msra.mxu1 %v698_v38  ;;  %332 = vmatprep.subr.bf16.mxu0 %v699_v39  ;;  %v727_v58 = vld [vmem:[%s1102_s1] ss:$16 sps:$4 sm:$0xff]   ;;  %v728_v59 = vld [vmem:[%s1102_s1 + $0x8] ss:$16 sps:$4 sm:$0xff]  }
   0xe   :  { %393 = vmatprep.subr.bf16.mxu1 %v701_v40  ;;  %v147_v38 = vshrl.u32 %v146_v37, 7 }
  0x10   :  { %333 = vmatpush1.bf16.msra.mxu0 %v703_v41  ;;  %v148_v39 = vsub.s32 0, %v147_v38  ;;  %v156_v40 = vsub.s32 2, %v147_v38  ;;  %v152_v41 = vsub.s32 1, %v147_v38 }
  0x11   :  { %394 = vmatpush1.bf16.msra.mxu1 %v704_v42  ;;  %334 = vmatprep.subr.bf16.mxu0 %v705_v43  ;;  %v160_v42 = vsub.s32 3, %v147_v38 }
  0x12   :  { %395 = vmatprep.subr.bf16.mxu1 %v707_v44 }
  0x14   :  { %335 = vmatpush1.bf16.msra.mxu0 %v709_v45 }
  0x15   :  { %396 = vmatpush1.bf16.msra.mxu1 %v710_v46  ;;  %336 = vmatprep.subr.bf16.mxu0 %v711_v47 }
  0x16   :  { %397 = vmatprep.subr.bf16.mxu1 %v713_v48 }
  0x18   :  { %337 = vmatpush1.bf16.msra.mxu0 %v715_v49 }
  0x19   :  { %398 = vmatpush1.bf16.msra.mxu1 %v716_v50  ;;  %338 = vmatprep.subr.bf16.mxu0 %v717_v51 }
  0x1a   :  { %399 = vmatprep.subr.bf16.mxu1 %v719_v52 }
  0x1c   :  { %339 = vmatpush1.bf16.msra.mxu0 %v721_v54 }
  0x1d   :  { %400 = vmatpush1.bf16.msra.mxu1 %v722_v55  ;;  %340 = vmatprep.subr.bf16.mxu0 %v723_v56 }
  0x1e   :  { %401 = vmatprep.subr.bf16.mxu1 %v725_v57 }
  0x20   :  { %341 = vmatpush1.bf16.msra.mxu0 %v727_v58 }
  0x21   :  { %402 = vmatpush1.bf16.msra.mxu1 %v728_v59 }
  0x8b   :  { %v27_v10 = vpop.xlane.xlu0 %26  ;;  %v31_v11 = vpop.xlane.xlu1 %30 }
  0x8c   :  { %v39_v12 = vmul.f32 0.0078125, %v27_v10  ;;  %v41_v13 = vmul.f32 0.0078125, %v31_v11 }
  0x8e   :  { %v838_v14 = vsub.f32 %v21_v0, %v39_v12  ;;  %v840_v15 = vsub.f32 %v23_v1, %v41_v13  ;;  %v626_v13 = vld [vmem:[%s1103_s3] ss:$0 sm:$0xff] }
  0x8f   :  { %v29_v16 = vpop.xlane.xlu0 %28  ;;  %v33_v17 = vpop.xlane.xlu1 %32 }
  0x90   :  { %v40_v18 = vmul.f32 0.0078125, %v29_v16  ;;  %v49_v19 = vmul.f32 %v838_v14, %v838_v14  ;;  %v42_v20 = vmul.f32 0.0078125, %v33_v17  ;;  %v51_v23 = vmul.f32 %v840_v15, %v840_v15 }
  0x92   :  { %v844_v21 = vsub.f32 %v22_v2, %v40_v18  ;;  %54 = vadd.xlane.f32.xlu1 %v49_v19  ;;  %v846_v22 = vsub.f32 %v24_v3, %v42_v20  ;;  %v627_v20 = vld [vmem:[%s1104_s4] ss:$0 sm:$0xff] }
  0x93   :  { %v37_v24 = vpop.xlane.xlu0 %36 }
  0x94   :  { %v43_v25 = vmul.f32 0.0078125, %v37_v24  ;;  %v50_v26 = vmul.f32 %v844_v21, %v844_v21  ;;  %v52_v28 = vmul.f32 %v846_v22, %v846_v22 }
  0x96   :  { %v852_v27 = vsub.f32 %v25_v4, %v43_v25  ;;  %58 = vadd.xlane.f32.xlu1 %v51_v23  ;;  %56 = vadd.xlane.f32.xlu0 %v50_v26 }
  0x98   :  { %v53_v29 = vmul.f32 %v852_v27, %v852_v27 }
  0x9a   :  { %60 = vadd.xlane.f32.xlu0 %v52_v28  ;;  %v62_v30 = vsel %vm34_vm0, %v53_v29, 0.0 }
  0x9b   :  { %63 = vadd.xlane.f32.xlu1 %v62_v30 }
 0x11b   :  { %v55_v60 = vpop.xlane.xlu1 %54 }
 0x11c   :  { %v65_v61 = vmul.f32 0.0078125, %v55_v60 }
 0x11e   :  { %v70_v62 = vadd.f32 1e-12, %v65_v61 }
 0x11f   :  { %v59_v63 = vpop.xlane.xlu1 %58  ;;  %v57_v0 = vpop.xlane.xlu0 %56 }
 0x120   :  { %729 = vrsqrt.f32 %v70_v62  ;;  %v67_v1 = vmul.f32 0.0078125, %v59_v63  ;;  %v66_v2 = vmul.f32 0.0078125, %v57_v0 }
 0x122   :  { %v71_v3 = vadd.f32 1e-12, %v66_v2  ;;  %v72_v4 = vadd.f32 1e-12, %v67_v1 }
 0x123   :  { %v61_v5 = vpop.xlane.xlu0 %60 }
 0x124   :  { %v68_v6 = vmul.f32 0.0078125, %v61_v5  ;;  %v64_v7 = vpop.xlane.xlu1 %63  ;;  %731 = vrsqrt.f32 %v71_v3 }
 0x125   :  { %v69_v8 = vmul.f32 0.0078125, %v64_v7  ;;  %733 = vrsqrt.f32 %v72_v4 }
 0x126   :  { %v73_v9 = vadd.f32 1e-12, %v68_v6 }
 0x127   :  { %v74_v10 = vadd.f32 1e-12, %v69_v8 }
 0x128   :  { %735 = vrsqrt.f32 %v73_v9 }
 0x129   :  { %737 = vrsqrt.f32 %v74_v10 }
 0x12d   :  { %v730_v11 = vpop.eup %729 }
 0x12e   :  { %v80_v12 = vmul.f32 %v730_v11, %v838_v14 }
 0x130   :  { %v92_v18 = vmul.f32 %v626_v13, %v80_v12 }
 0x131   :  { %v732_v16 = vpop.eup %731 }
 0x132   :  { %v81_v17 = vmul.f32 %v732_v16, %v844_v21  ;;  %v734_v19 = vpop.eup %733  ;;  %v104_v26 = vadd.f32 %v627_v20, %v92_v18 }
 0x133   :  { %v82_v14 = vmul.f32 %v734_v19, %v840_v15 }
 0x134   :  { %v93_v24 = vmul.f32 %v626_v13, %v81_v17 }
 0x135   :  { %v736_v23 = vpop.eup %735  ;;  %v94_v21 = vmul.f32 %v626_v13, %v82_v14 }
 0x136   :  { %v83_v25 = vmul.f32 %v736_v23, %v846_v22  ;;  %v105_v28 = vadd.f32 %v627_v20, %v93_v24  ;;  %v738_v31 = vpop.eup %737 }
 0x137   :  { %v84_v33 = vmul.f32 %v738_v31, %v852_v27  ;;  %v106_v34 = vadd.f32 %v627_v20, %v94_v21  ;;  %v144_v27 = vld [vmem:[%s1105_s2] sm:$0xf] }
 0x138   :  { %v109_v29 = vpack.c.bf16 %v105_v28, %v104_v26  ;;  %v95_v30 = vmul.f32 %v626_v13, %v83_v25  ;;  %v963_v43 = vrot.slane %v144_v27, %v148_v39  ;;  %v965_v44 = vrot.slane %v144_v27, %v156_v40 }
 0x139   :  { %v96_v22 = vmul.f32 %v626_v13, %v84_v33  ;;  %v967_v47 = vrot.slane %v144_v27, %v152_v41  ;;  %v969_v48 = vrot.slane %v144_v27, %v160_v42 }
 0x13a   :  { %359 = vmatmul.mubr.bf16.vlgmr.msra.gmra.mxu0 %v109_v29  ;;  %420 = vmatmul.mubr.bf16.vlgmr.msra.gmra.mxu1 %v109_v29  ;;  %v107_v32 = vadd.f32 %v627_v20, %v95_v30 }
 0x13b   :  { %368 = vmatprep.mubr.bf16.mxu0 %v779_v53  ;;  %429 = vmatprep.mubr.bf16.mxu1 %v779_v53  ;;  %v108_v15 = vadd.f32 %v627_v20, %v96_v22 }
 0x13c   :  { %v110_v35 = vpack.c.bf16 %v107_v32, %v106_v34 }
 0x13d   :  { %v111_v36 = vpack.c.bf16 %v108_v15, %v108_v15 }
 0x142   :  { %369 = vmatmul.mubr.bf16.gmra.mxu0 %v110_v35  ;;  %430 = vmatmul.mubr.bf16.gmra.mxu1 %v110_v35 }
 0x143   :  { %378 = vmatprep.mubr.bf16.mxu0 %v779_v53  ;;  %439 = vmatprep.mubr.bf16.mxu1 %v779_v53 }
 0x14a   :  { %379 = vmatmul.mubr.bf16.gmra.mxu0 %v111_v36  ;;  %440 = vmatmul.mubr.bf16.gmra.mxu1 %v111_v36 }
 0x1fa   :  { %v360_v45 = vpop.f32.mrf.mxu0  ;;  %v421_v46 = vpop.f32.mrf.mxu1 }
 0x1fb   :  { %v972_v49 = vadd.f32 %v360_v45, %v963_v43  ;;  %v975_v50 = vadd.f32 %v421_v46, %v965_v44 }
 0x1fc   :  { %v362_v51 = vpop.f32.mrf.mxu0  ;;  %v423_v52 = vpop.f32.mrf.mxu1 }
 0x1fd   :  { %v468_v53 = vmul.f32 0.70710677, %v972_v49  ;;  %v470_v54 = vmul.f32 0.70710677, %v975_v50  ;;  %v980_v55 = vadd.f32 %v362_v51, %v967_v47  ;;  %v983_v56 = vadd.f32 %v423_v52, %v969_v48 }
 0x1fe   :  { %v364_v57 = vpop.f32.mrf.mxu0  ;;  %v425_v58 = vpop.f32.mrf.mxu1  ;;  %v448_v38 = vmul.f32 0.5, %v972_v49  ;;  %v450_v27 = vmul.f32 0.5, %v975_v50 }
 0x1ff   :  { %739 = verf.f32 %v468_v53  ;;  %v986_v59 = vadd.f32 %v364_v57, %v963_v43  ;;  %v989_v60 = vadd.f32 %v425_v58, %v965_v44  ;;  %v469_v61 = vmul.f32 0.70710677, %v980_v55 }
 0x200   :  { %741 = verf.f32 %v470_v54  ;;  %v366_v62 = vpop.f32.mrf.mxu0  ;;  %v427_v63 = vpop.f32.mrf.mxu1  ;;  %v471_v0 = vmul.f32 0.70710677, %v983_v56  ;;  %v449_v41 = vmul.f32 0.5, %v980_v55  ;;  %v451_v51 = vmul.f32 0.5, %v983_v56 }
 0x201   :  { %v472_v1 = vmul.f32 0.70710677, %v986_v59  ;;  %743 = verf.f32 %v469_v61  ;;  %v474_v2 = vmul.f32 0.70710677, %v989_v60  ;;  %v996_v3 = vadd.f32 %v366_v62, %v967_v47 }
 0x202   :  { %v999_v4 = vadd.f32 %v427_v63, %v969_v48  ;;  %v370_v5 = vpop.f32.mrf.mxu0  ;;  %v431_v6 = vpop.f32.mrf.mxu1  ;;  %745 = verf.f32 %v471_v0  ;;  %v452_v54 = vmul.f32 0.5, %v986_v59  ;;  %v454_v62 = vmul.f32 0.5, %v989_v60 }
 0x203   :  { %v1002_v7 = vadd.f32 %v370_v5, %v963_v43  ;;  %v1005_v8 = vadd.f32 %v431_v6, %v965_v44  ;;  %747 = verf.f32 %v472_v1  ;;  %v473_v9 = vmul.f32 0.70710677, %v996_v3 }
 0x204   :  { %v372_v10 = vpop.f32.mrf.mxu0  ;;  %v433_v11 = vpop.f32.mrf.mxu1  ;;  %749 = verf.f32 %v474_v2  ;;  %v475_v12 = vmul.f32 0.70710677, %v999_v4  ;;  %v453_v60 = vmul.f32 0.5, %v996_v3 }
 0x205   :  { %v476_v13 = vmul.f32 0.70710677, %v1002_v7  ;;  %751 = verf.f32 %v473_v9  ;;  %v478_v16 = vmul.f32 0.70710677, %v1005_v8  ;;  %v1012_v17 = vadd.f32 %v372_v10, %v967_v47 }
 0x206   :  { %v374_v18 = vpop.f32.mrf.mxu0  ;;  %v435_v19 = vpop.f32.mrf.mxu1  ;;  %753 = verf.f32 %v475_v12  ;;  %v1015_v20 = vadd.f32 %v433_v11, %v969_v48 }
 0x207   :  { %v1018_v23 = vadd.f32 %v374_v18, %v963_v43  ;;  %v1021_v24 = vadd.f32 %v435_v19, %v965_v44  ;;  %755 = verf.f32 %v476_v13  ;;  %v477_v25 = vmul.f32 0.70710677, %v1012_v17 }
 0x208   :  { %v376_v26 = vpop.f32.mrf.mxu0  ;;  %v437_v28 = vpop.f32.mrf.mxu1  ;;  %757 = verf.f32 %v478_v16  ;;  %v479_v14 = vmul.f32 0.70710677, %v1015_v20  ;;  %v455_v19 = vmul.f32 0.5, %v999_v4  ;;  %v456_v4 = vmul.f32 0.5, %v1002_v7 }
 0x209   :  { %759 = verf.f32 %v477_v25  ;;  %v480_v29 = vmul.f32 0.70710677, %v1018_v23  ;;  %v482_v30 = vmul.f32 0.70710677, %v1021_v24  ;;  %v1028_v32 = vadd.f32 %v376_v26, %v967_v47 }
 0x20a   :  { %v380_v31 = vpop.f32.mrf.mxu0  ;;  %v441_v21 = vpop.f32.mrf.mxu1  ;;  %761 = verf.f32 %v479_v14  ;;  %v1031_v33 = vadd.f32 %v437_v28, %v969_v48 }
 0x20b   :  { %v1034_v34 = vadd.f32 %v380_v31, %v963_v43  ;;  %763 = verf.f32 %v480_v29  ;;  %v1037_v22 = vadd.f32 %v441_v21, %v965_v44  ;;  %v481_v39 = vmul.f32 0.70710677, %v1028_v32 }
 0x20c   :  { %v740_v35 = vpop.eup %739  ;;  %v382_v15 = vpop.f32.mrf.mxu0  ;;  %765 = verf.f32 %v482_v30  ;;  %v483_v42 = vmul.f32 0.70710677, %v1031_v33 }
 0x20d   :  { %v443_v36 = vpop.f32.mrf.mxu1  ;;  %v742_v37 = vpop.eup %741  ;;  %v508_v40 = vadd.f32 1.0, %v740_v35  ;;  %767 = verf.f32 %v481_v39  ;;  %v484_v52 = vmul.f32 0.70710677, %v1034_v34  ;;  %v486_v50 = vmul.f32 0.70710677, %v1037_v22 }
 0x20e   :  { %v384_v43 = vpop.f32.mrf.mxu0  ;;  %v744_v46 = vpop.eup %743  ;;  %v510_v44 = vadd.f32 1.0, %v742_v37  ;;  %769 = verf.f32 %v483_v42  ;;  %v1050_v63 = vadd.f32 %v382_v15, %v967_v47  ;;  %v1053_v5 = vadd.f32 %v443_v36, %v969_v48 }
 0x20f   :  { %v445_v45 = vpop.f32.mrf.mxu1  ;;  %v746_v49 = vpop.eup %745  ;;  %v509_v53 = vadd.f32 1.0, %v744_v46  ;;  %771 = verf.f32 %v484_v52  ;;  %v528_v0 = vmul.f32 %v508_v40, %v448_v38  ;;  %v457_v36 = vmul.f32 0.5, %v1012_v17 }
 0x210   :  { %v385_v57 = vpop.f32.mrf.mxu0  ;;  %v748_v58 = vpop.eup %747  ;;  %v511_v61 = vadd.f32 1.0, %v746_v49  ;;  %v530_v6 = vmul.f32 %v510_v44, %v450_v27  ;;  %v485_v11 = vmul.f32 0.70710677, %v1050_v63  ;;  %773 = verf.f32 %v486_v50 }
 0x211   :  { %v446_v55 = vpop.f32.mrf.mxu1  ;;  %v750_v56 = vpop.eup %749  ;;  %v529_v1 = vmul.f32 %v509_v53, %v449_v41  ;;  %v512_v2 = vadd.f32 1.0, %v748_v58  ;;  %v487_v29 = vmul.f32 0.70710677, %v1053_v5  ;;  %v458_v40 = vmul.f32 0.5, %v1005_v8 }
 0x212   :  { %v752_v59 = vpop.eup %751  ;;  %v531_v9 = vmul.f32 %v511_v61, %v451_v51  ;;  %v514_v10 = vadd.f32 1.0, %v750_v56  ;;  %775 = verf.f32 %v485_v11  ;;  %v459_v27 = vmul.f32 0.5, %v1015_v20 }
 0x213   :  { %v754_v12 = vpop.eup %753  ;;  %v670_v13 = vpack.c.bf16 %v529_v1, %v528_v0  ;;  %v513_v16 = vadd.f32 1.0, %v752_v59  ;;  %v532_v26 = vmul.f32 %v512_v2, %v452_v54  ;;  %777 = verf.f32 %v487_v29 }
 0x214   :  { %v756_v47 = vpop.eup %755  ;;  %v671_v18 = vpack.c.bf16 %v531_v9, %v530_v6  ;;  %v515_v25 = vadd.f32 1.0, %v754_v12  ;;  %v534_v3 = vmul.f32 %v514_v10, %v454_v62  ;;  %v460_v49 = vmul.f32 0.5, %v1018_v23 }
 0x215   :  { %v758_v48 = vpop.eup %757  ;;  %612 = vst [vmem:[%s1106_s5] sm:$0xff] %v670_v13  ;;  %v533_v28 = vmul.f32 %v513_v16, %v453_v60  ;;  %v516_v14 = vadd.f32 1.0, %v756_v47  ;;  %v461_v53 = vmul.f32 0.5, %v1028_v32  ;;  %v462_v57 = vmul.f32 0.5, %v1021_v24 }
 0x216   :  { %v760_v30 = vpop.eup %759  ;;  %613 = vst [vmem:[%s1106_s5 + $0x8] sm:$0xff] %v671_v18  ;;  %v535_v31 = vmul.f32 %v515_v25, %v455_v19  ;;  %v518_v21 = vadd.f32 1.0, %v758_v48  ;;  %v463_v55 = vmul.f32 0.5, %v1031_v33  ;;  %v464_v24 = vmul.f32 0.5, %v1034_v34 }
 0x217   :  { %v762_v35 = vpop.eup %761  ;;  %v672_v15 = vpack.c.bf16 %v533_v28, %v532_v26  ;;  %v517_v37 = vadd.f32 1.0, %v760_v30  ;;  %v536_v7 = vmul.f32 %v516_v14, %v456_v4  ;;  %v465_v33 = vmul.f32 0.5, %v1050_v63 }
 0x218   :  { %v764_v38 = vpop.eup %763  ;;  %v673_v39 = vpack.c.bf16 %v535_v31, %v534_v3  ;;  %v519_v41 = vadd.f32 1.0, %v762_v35  ;;  %v538_v17 = vmul.f32 %v518_v21, %v458_v40  ;;  %v466_v13 = vmul.f32 0.5, %v1037_v22 }
 0x219   :  { %v766_v42 = vpop.eup %765  ;;  %614 = vst [vmem:[%s1106_s5 + $0x10] sm:$0xff] %v672_v15  ;;  %v537_v43 = vmul.f32 %v517_v37, %v457_v36  ;;  %v520_v46 = vadd.f32 1.0, %v764_v38  ;;  %v467_v60 = vmul.f32 0.5, %v1053_v5 }
 0x21a   :  { %615 = vst [vmem:[%s1106_s5 + $0x18] sm:$0xff] %v673_v39  ;;  %v539_v45 = vmul.f32 %v519_v41, %v459_v27  ;;  %v768_v44 = vpop.eup %767  ;;  %v522_v8 = vadd.f32 1.0, %v766_v42 }
 0x21b   :  { %v674_v51 = vpack.c.bf16 %v537_v43, %v536_v7  ;;  %v770_v52 = vpop.eup %769  ;;  %v521_v54 = vadd.f32 1.0, %v768_v44  ;;  %v540_v61 = vmul.f32 %v520_v46, %v460_v49 }
 0x21c   :  { %v675_v20 = vpack.c.bf16 %v539_v45, %v538_v17  ;;  %v772_v50 = vpop.eup %771  ;;  %v523_v58 = vadd.f32 1.0, %v770_v52  ;;  %v542_v23 = vmul.f32 %v522_v8, %v462_v57 }
 0x21d   :  { %616 = vst [vmem:[%s1106_s5 + $0x20] sm:$0xff] %v674_v51  ;;  %v541_v62 = vmul.f32 %v521_v54, %v461_v53  ;;  %v774_v32 = vpop.eup %773  ;;  %v524_v1 = vadd.f32 1.0, %v772_v50 }
 0x21e   :  { %617 = vst [vmem:[%s1106_s5 + $0x28] sm:$0xff] %v675_v20  ;;  %v543_v56 = vmul.f32 %v523_v58, %v463_v55  ;;  %v526_v9 = vadd.f32 1.0, %v774_v32 }
 0x21f   :  { %v676_v0 = vpack.c.bf16 %v541_v62, %v540_v61  ;;  %v776_v2 = vpop.eup %775  ;;  %v544_v11 = vmul.f32 %v524_v1, %v464_v24 }
 0x220   :  { %v677_v59 = vpack.c.bf16 %v543_v56, %v542_v23  ;;  %v525_v6 = vadd.f32 1.0, %v776_v2  ;;  %v778_v10 = vpop.eup %777  ;;  %v546_v18 = vmul.f32 %v526_v9, %v466_v13 }
 0x221   :  { %618 = vst [vmem:[%s1106_s5 + $0x30] sm:$0xff] %v676_v0  ;;  %v527_v16 = vadd.f32 1.0, %v778_v10 }
 0x222   :  { %619 = vst [vmem:[%s1106_s5 + $0x38] sm:$0xff] %v677_v59  ;;  %v545_v12 = vmul.f32 %v525_v6, %v465_v33 }
 0x223   :  { %v547_v19 = vmul.f32 %v527_v16, %v467_v60 }
 0x224   :  { %v678_v47 = vpack.c.bf16 %v545_v12, %v544_v11 }
 0x225   :  { %v679_v34 = vpack.c.bf16 %v547_v19, %v546_v18 }
 0x226   :  { %620 = vst [vmem:[%s1106_s5 + $0x40] sm:$0x11] %v678_v47 }
 0x227   :  { %621 = vst [vmem:[%s1106_s5 + $0x48] sm:$0x11] %v679_v34 }

// kernel: vit_backbone_forward.17
= control target key start
LH: loop header
LB: loop body
LE: loop exit
PB: predicated region body
PF: predicated region fallthrough
CT: control target
= control target key end

     0   :  { %s821_s1 = inlined_call_operand.vmem [shape: bf16[512,128], index: 1, kind: input, shape index: {}]   ;;  %s822_s0 = inlined_call_operand.vmem [shape: bf16[34,512], index: 0, kind: input, shape index: {}]   ;;  %s823_s2 = inlined_call_operand.vmem [shape: f32[1,128], index: 2, kind: input, shape index: {}]   ;;  %s824_s3 = inlined_call_operand.vmem [shape: f32[34,128], index: 3, kind: input, shape index: {}, may-alias: {3,4}]   ;;  %s825_s4 = inlined_call_operand.vmem [shape: f32[34,128], index: 4, kind: output, shape index: {}, may-alias: {3,4}]  }
   0x1   :  { %v589_v0 = vld [vmem:[%s821_s1 + $0x78] sm:$0xff]   ;;  %v593_v4 = vld [vmem:[%s821_s1 + $0x70] sm:$0xff]   ;;  %v597_v8 = vld [vmem:[%s821_s1 + $0x68] sm:$0xff]  }
   0x2   :  { %v590_v1 = vld [vmem:[%s821_s1 + $0xf8] sm:$0xff]   ;;  %521 = vmatprep.subr.bf16.mxu0 %v589_v0  ;;  %v594_v5 = vld [vmem:[%s821_s1 + $0xf0] sm:$0xff]   ;;  %v598_v9 = vld [vmem:[%s821_s1 + $0xe8] sm:$0xff]  }
   0x3   :  { %v591_v2 = vld [vmem:[%s821_s1 + $0x38] sm:$0xff]   ;;  %555 = vmatprep.subr.bf16.mxu1 %v590_v1  ;;  %v595_v6 = vld [vmem:[%s821_s1 + $0x30] sm:$0xff]   ;;  %v599_v10 = vld [vmem:[%s821_s1 + $0x28] sm:$0xff]  }
   0x4   :  { %v592_v3 = vld [vmem:[%s821_s1 + $0xb8] sm:$0xff]   ;;  %522 = vmatpush3.bf16.msra.mxu0 %v591_v2  ;;  %v596_v7 = vld [vmem:[%s821_s1 + $0xb0] sm:$0xff]   ;;  %v600_v11 = vld [vmem:[%s821_s1 + $0xa8] sm:$0xff]  }
   0x5   :  { %556 = vmatpush3.bf16.msra.mxu1 %v592_v3  ;;  %523 = vmatprep.subr.bf16.mxu0 %v593_v4  ;;  %v601_v12 = vld [vmem:[%s821_s1 + $0x60] sm:$0xff]   ;;  %v605_v16 = vld [vmem:[%s821_s1 + $0x58] sm:$0xff]   ;;  %v609_v20 = vld [vmem:[%s821_s1 + $0x50] sm:$0xff]  }
   0x6   :  { %557 = vmatprep.subr.bf16.mxu1 %v594_v5  ;;  %v602_v13 = vld [vmem:[%s821_s1 + $0xe0] sm:$0xff]   ;;  %v606_v17 = vld [vmem:[%s821_s1 + $0xd8] sm:$0xff]   ;;  %v610_v21 = vld [vmem:[%s821_s1 + $0xd0] sm:$0xff]  }
   0x7   :  { %v603_v14 = vld [vmem:[%s821_s1 + $0x20] sm:$0xff]   ;;  %v607_v18 = vld [vmem:[%s821_s1 + $0x18] sm:$0xff]   ;;  %v611_v22 = vld [vmem:[%s821_s1 + $0x10] sm:$0xff]  }
   0x8   :  { %524 = vmatpush3.bf16.msra.mxu0 %v595_v6  ;;  %v604_v15 = vld [vmem:[%s821_s1 + $0xa0] sm:$0xff]   ;;  %v608_v19 = vld [vmem:[%s821_s1 + $0x98] sm:$0xff]   ;;  %v612_v23 = vld [vmem:[%s821_s1 + $0x90] sm:$0xff]  }
   0x9   :  { %558 = vmatpush3.bf16.msra.mxu1 %v596_v7  ;;  %525 = vmatprep.subr.bf16.mxu0 %v597_v8  ;;  %v613_v24 = vld [vmem:[%s821_s1 + $0x48] sm:$0xff]   ;;  %v617_v28 = vld [vmem:[%s821_s1 + $0x40] sm:$0xff]  }
   0xa   :  { %559 = vmatprep.subr.bf16.mxu1 %v598_v9  ;;  %v614_v25 = vld [vmem:[%s821_s1 + $0xc8] sm:$0xff]   ;;  %v618_v29 = vld [vmem:[%s821_s1 + $0xc0] sm:$0xff]  }
   0xb   :  { %v615_v26 = vld [vmem:[%s821_s1 + $0x8] sm:$0xff]   ;;  %v619_v30 = vld [vmem:[%s821_s1] sm:$0xff]  }
   0xc   :  { %526 = vmatpush3.bf16.msra.mxu0 %v599_v10  ;;  %v616_v27 = vld [vmem:[%s821_s1 + $0x88] sm:$0xff]   ;;  %v620_v31 = vld [vmem:[%s821_s1 + $0x80] sm:$0xff]  }
   0xd   :  { %560 = vmatpush3.bf16.msra.mxu1 %v600_v11  ;;  %527 = vmatprep.subr.bf16.mxu0 %v601_v12  ;;  %v621_v32 = vld [vmem:[%s822_s0] ss:$16 sps:$4 sm:$0xff]   ;;  %v623_v33 = vld [vmem:[%s822_s0 + $0x4] ss:$16 sps:$4 sm:$0xff]   ;;  %v624_v34 = vld [vmem:[%s822_s0 + $0x8] ss:$16 sps:$4 sm:$0xff]  }
   0xe   :  { %561 = vmatprep.subr.bf16.mxu1 %v602_v13  ;;  %v626_v35 = vld [vmem:[%s822_s0 + $0xc] ss:$16 sps:$4 sm:$0xff]   ;;  %377 = vmatprep.mubr.bf16.mxu0 %v623_v33  ;;  %v627_v36 = vld [vmem:[%s822_s0 + $0x24] ss:$16 sps:$4 sm:$0xff]   ;;  %v631_v40 = vld [vmem:[%s822_s0 + $0x20] ss:$16 sps:$4 sm:$0xff]  }
   0xf   :  { %433 = vmatprep.mubr.bf16.mxu1 %v626_v35  ;;  %v629_v37 = vld [vmem:[%s822_s0 + $0x2c] ss:$16 sps:$4 sm:$0xff]   ;;  %v26_v38 = vld [vmem:[%s822_s0 + $0x40] sm:$0x11]  ;;  %v632_v41 = vld [vmem:[%s822_s0 + $0x28] ss:$16 sps:$4 sm:$0xff]  }
  0x10   :  { %528 = vmatpush3.bf16.msra.mxu0 %v603_v14  ;;  %v27_v39 = vld [vmem:[%s822_s0 + $0x48] sm:$0x11]  ;;  %v486_v42 = vcombine.high %v26_v38, %v26_v38  ;;  %v485_v44 = vcombine.low %v26_v38, %v26_v38  ;;  %v476_v48 = vld [vmem:[%s823_s2] ss:$0 sm:$0xff] }
  0x11   :  { %562 = vmatpush3.bf16.msra.mxu1 %v604_v15  ;;  %529 = vmatprep.subr.bf16.mxu0 %v605_v16  ;;  %v488_v43 = vcombine.high %v27_v39, %v27_v39  ;;  %v487_v45 = vcombine.low %v27_v39, %v27_v39  ;;  %v457_v56 = vld [vmem:[%s824_s3] sm:$0xff]  ;;  %v458_v2 = vld [vmem:[%s824_s3 + $0x8] sm:$0xff] }
  0x12   :  { %563 = vmatprep.subr.bf16.mxu1 %v606_v17 }
  0x14   :  { %530 = vmatpush3.bf16.msra.mxu0 %v607_v18 }
  0x15   :  { %564 = vmatpush3.bf16.msra.mxu1 %v608_v19  ;;  %531 = vmatprep.subr.bf16.mxu0 %v609_v20 }
  0x16   :  { %565 = vmatprep.subr.bf16.mxu1 %v610_v21 }
  0x18   :  { %532 = vmatpush3.bf16.msra.mxu0 %v611_v22 }
  0x19   :  { %566 = vmatpush3.bf16.msra.mxu1 %v612_v23  ;;  %533 = vmatprep.subr.bf16.mxu0 %v613_v24 }
  0x1a   :  { %567 = vmatprep.subr.bf16.mxu1 %v614_v25 }
  0x1c   :  { %534 = vmatpush3.bf16.msra.mxu0 %v615_v26 }
  0x1d   :  { %568 = vmatpush3.bf16.msra.mxu1 %v616_v27  ;;  %535 = vmatprep.subr.bf16.mxu0 %v617_v28 }
  0x1e   :  { %569 = vmatprep.subr.bf16.mxu1 %v618_v29 }
  0x20   :  { %536 = vmatpush3.bf16.msra.mxu0 %v619_v30 }
  0x21   :  { %570 = vmatpush3.bf16.msra.mxu1 %v620_v31 }
  0x23   :  { %378 = vmatmul.mubr.bf16.vlgmr.msra.gmra.mxu0 %v621_v32 }
  0x24   :  { %434 = vmatmul.mubr.bf16.vlgmr.msra.gmra.mxu1 %v624_v34  ;;  %385 = vmatprep.mubr.bf16.mxu0 %v627_v36 }
  0x25   :  { %441 = vmatprep.mubr.bf16.mxu1 %v629_v37 }
  0x2b   :  { %386 = vmatmul.mubr.bf16.gmra.mxu0 %v631_v40 }
  0x2c   :  { %442 = vmatmul.mubr.bf16.gmra.mxu1 %v632_v41  ;;  %393 = vmatprep.mubr.bf16.mxu0 %v486_v42 }
  0x2d   :  { %449 = vmatprep.mubr.bf16.mxu1 %v488_v43 }
  0x33   :  { %394 = vmatmul.mubr.bf16.gmra.mxu0 %v485_v44 }
  0x34   :  { %450 = vmatmul.mubr.bf16.gmra.mxu1 %v487_v45 }
  0xe3   :  { %v537_v46 = vpop.f32.mrf.mxu0 }
  0xe4   :  { %v571_v47 = vpop.f32.mrf.mxu1 }
  0xe5   :  { %v538_v49 = vpop.f32.mrf.mxu0 }
  0xe6   :  { %v539_v50 = vadd.f32 %v538_v49, %v537_v46  ;;  %v572_v51 = vpop.f32.mrf.mxu1 }
  0xe7   :  { %v540_v52 = vpop.f32.mrf.mxu0  ;;  %v573_v54 = vadd.f32 %v572_v51, %v571_v47 }
  0xe8   :  { %v380_v53 = vadd.f32 %v539_v50, %v476_v48  ;;  %v574_v55 = vpop.f32.mrf.mxu1 }
  0xe9   :  { %v541_v57 = vpop.f32.mrf.mxu0 }
  0xea   :  { %v436_v58 = vadd.f32 %v573_v54, %v380_v53  ;;  %v542_v59 = vadd.f32 %v541_v57, %v540_v52  ;;  %v575_v60 = vpop.f32.mrf.mxu1 }
  0xeb   :  { %v543_v61 = vpop.f32.mrf.mxu0  ;;  %v576_v0 = vadd.f32 %v575_v60, %v574_v55 }
  0xec   :  { %v462_v62 = vadd.f32 %v457_v56, %v436_v58  ;;  %v383_v63 = vadd.f32 %v542_v59, %v476_v48  ;;  %v577_v1 = vpop.f32.mrf.mxu1 }
  0xed   :  { %v544_v3 = vpop.f32.mrf.mxu0 }
  0xee   :  { %467 = vst [vmem:[%s825_s4] sm:$0xff] %v462_v62  ;;  %v439_v4 = vadd.f32 %v576_v0, %v383_v63  ;;  %v545_v5 = vadd.f32 %v544_v3, %v543_v61  ;;  %v578_v6 = vpop.f32.mrf.mxu1 }
  0xef   :  { %v546_v7 = vpop.f32.mrf.mxu0  ;;  %v579_v10 = vadd.f32 %v578_v6, %v577_v1 }
  0xf0   :  { %v463_v8 = vadd.f32 %v458_v2, %v439_v4  ;;  %v388_v9 = vadd.f32 %v545_v5, %v476_v48  ;;  %v580_v11 = vpop.f32.mrf.mxu1 }
  0xf1   :  { %v547_v13 = vpop.f32.mrf.mxu0 }
  0xf2   :  { %v444_v14 = vadd.f32 %v579_v10, %v388_v9  ;;  %v548_v15 = vadd.f32 %v547_v13, %v546_v7  ;;  %v581_v16 = vpop.f32.mrf.mxu1 }
  0xf3   :  { %v549_v17 = vpop.f32.mrf.mxu0  ;;  %v582_v20 = vadd.f32 %v581_v16, %v580_v11 }
  0xf4   :  { %v391_v19 = vadd.f32 %v548_v15, %v476_v48  ;;  %v583_v21 = vpop.f32.mrf.mxu1 }
  0xf5   :  { %v459_v12 = vld [vmem:[%s824_s3 + $0x10] sm:$0xff]  ;;  %v550_v23 = vpop.f32.mrf.mxu0 }
  0xf6   :  { %468 = vst [vmem:[%s825_s4 + $0x8] sm:$0xff] %v463_v8  ;;  %v464_v18 = vadd.f32 %v459_v12, %v444_v14  ;;  %v447_v24 = vadd.f32 %v582_v20, %v391_v19  ;;  %v551_v25 = vadd.f32 %v550_v23, %v549_v17  ;;  %v584_v26 = vpop.f32.mrf.mxu1 }
  0xf7   :  { %v552_v27 = vpop.f32.mrf.mxu0  ;;  %v585_v30 = vadd.f32 %v584_v26, %v583_v21 }
  0xf8   :  { %v396_v29 = vadd.f32 %v551_v25, %v476_v48  ;;  %v586_v31 = vpop.f32.mrf.mxu1 }
  0xf9   :  { %v553_v33 = vpop.f32.mrf.mxu0 }
  0xfa   :  { %v452_v34 = vadd.f32 %v585_v30, %v396_v29  ;;  %v587_v35 = vpop.f32.mrf.mxu1 }
  0xfd   :  { %v460_v22 = vld [vmem:[%s824_s3 + $0x18] sm:$0xff] }
  0xfe   :  { %469 = vst [vmem:[%s825_s4 + $0x10] sm:$0xff] %v464_v18  ;;  %v465_v28 = vadd.f32 %v460_v22, %v447_v24 }
 0x105   :  { %v461_v32 = vld [vmem:[%s824_s3 + $0x20] sm:$0x3] }
 0x106   :  { %470 = vst [vmem:[%s825_s4 + $0x18] sm:$0xff] %v465_v28  ;;  %v466_v36 = vadd.f32 %v461_v32, %v452_v34 }
 0x108   :  { %471 = vst [vmem:[%s825_s4 + $0x20] sm:$0x3] %v466_v36 }

</bundles_post_ra>
